<compile_context>
chip_gen: v5e
topology: v5e:2x2
jax: 0.10.0
libtpu: 0.0.40
codegen_flags: <defaults>
</compile_context>

<pallas_src>
import math
from functools import partial

import jax
import jax.numpy as jnp
from jax.experimental import pallas as pl
from jax.experimental.pallas import tpu as pltpu

_SQRT_2_OVER_PI = 0.7978845608028654


def _gelu_tanh(x):
    # tanh-approx GELU: one EUP tanh + a few VALU muls.
    return 0.5 * x * (1.0 + jnp.tanh(_SQRT_2_OVER_PI * (x + 0.044715 * x * x * x)))


def _layernorm(x, g, b, eps=1e-5):
    mu = jnp.mean(x, axis=-1, keepdims=True)
    xc = x - mu
    var = jnp.mean(xc * xc, axis=-1, keepdims=True)
    return xc * jax.lax.rsqrt(var + eps) * g + b


# ------------------------------- kernel -------------------------------------


def transformer_kernel(
    # per-batch-block token state (resident across the depth axis)
    h0_ref,
    # per-layer weights (streamed along the depth grid axis)
    ln1g_ref, ln1b_ref, wqkv_ref,
    *rest,
    n_heads, dim_head, project_out, bb, n_tokens,
):
    if project_out:
        (wo_ref, ob_ref, ln2g_ref, ln2b_ref,
         fw1_ref, fb1_ref, fw2_ref, fb2_ref, o_ref, h_ref) = rest
    else:  # only reachable when n_heads == 1 and dim_head == d_model
        (ln2g_ref, ln2b_ref,
         fw1_ref, fb1_ref, fw2_ref, fb2_ref, o_ref, h_ref) = rest
        wo_ref = ob_ref = None

    f32 = jnp.float32
    bf16 = jnp.bfloat16
    inner = n_heads * dim_head
    rows = bb * n_tokens
    l = pl.program_id(1)

    # ---- layer-0 prologue: load the (patch + pos + time) token state --------
    @pl.when(l == 0)
    def _():
        h_ref[...] = h0_ref[...].reshape(rows, -1)

    h = h_ref[...]                                                # (Bb*N, D) f32

    # ---- PreNorm(Attention) + residual --------------------------------------
    xn = _layernorm(h, ln1g_ref[...], ln1b_ref[...]).astype(bf16)
    # single fused QKV matmul (full MXU width); 1/sqrt(dh) folded into the Q
    # columns of wqkv by the wrapper.
    qkv = jnp.dot(xn, wqkv_ref[...], preferred_element_type=f32)  # (Bb*N, 3*inner)

    head_outs = []
    for hd in range(n_heads):                   # static unroll over heads
        lo = hd * dim_head
        q_h = qkv[:, lo:lo + dim_head].reshape(bb, n_tokens, dim_head).astype(bf16)
        k_h = qkv[:, inner + lo:inner + lo + dim_head] \
            .reshape(bb, n_tokens, dim_head).astype(bf16)
        v_h = qkv[:, 2 * inner + lo:2 * inner + lo + dim_head] \
            .reshape(bb, n_tokens, dim_head).astype(bf16)
        dots = jnp.einsum("bqe,bke->bqk", q_h, k_h,
                          preferred_element_type=f32)             # (Bb, N, N)
        dots = dots - jnp.max(dots, axis=-1, keepdims=True)
        e = jnp.exp(dots)
        attn = e * pl.reciprocal(jnp.sum(e, axis=-1, keepdims=True), approx=True)
        o_h = jnp.einsum("bqk,bke->bqe", attn.astype(bf16), v_h,
                         preferred_element_type=f32)              # (Bb, N, dh)
        head_outs.append(o_h.reshape(rows, dim_head))

    out = head_outs[0] if n_heads == 1 else jnp.concatenate(head_outs, axis=-1)

    if project_out:
        # single (Bb*N, inner) @ (inner, D) matmul on the head-concatenated out
        ao = jnp.dot(out.astype(bf16), wo_ref[...],
                     preferred_element_type=f32) + ob_ref[...]
    else:
        ao = out
    h = h + ao

    # ---- PreNorm(FeedForward) + residual -------------------------------------
    xn = _layernorm(h, ln2g_ref[...], ln2b_ref[...]).astype(bf16)
    f1 = jnp.dot(xn, fw1_ref[...], preferred_element_type=f32) + fb1_ref[...]
    f1 = _gelu_tanh(f1).astype(bf16)
    f2 = jnp.dot(f1, fw2_ref[...], preferred_element_type=f32) + fb2_ref[...]
    h = h + f2
    h_ref[...] = h

    # ---- last-layer epilogue: store the token state ---------------------------
    @pl.when(l == pl.num_programs(1) - 1)
    def _():
        o_ref[...] = h.reshape(o_ref.shape)


# ------------------------------ wrapper --------------------------------------


def _time_features(t, d_model):
    half = d_model // 8
    coef = math.log(10000.0) / (half - 1)
    freqs = jnp.exp(jnp.arange(half, dtype=jnp.float32) * (-coef))
    te = t[:, None] * freqs[None, :]
    return jnp.concatenate([jnp.sin(te), jnp.cos(te)], axis=1)     # (B, d_model//4)


def _pick_batch_block(B, max_bb=4):
    # Prefer the largest Bb (<= max_bb) dividing B that keeps the remaining
    # "parallel" batch axis even (both v7x TensorCores busy); otherwise the
    # largest Bb dividing B (weight-DMA amortization still wins).
    for bb in range(min(max_bb, B), 0, -1):
        if B % bb == 0 and (B // bb) % 2 == 0:
            return bb
    for bb in range(min(max_bb, B), 0, -1):
        if B % bb == 0:
            return bb
    return 1


def _vmem_limit_bytes(Bb, N, D, F, inner, n_heads, project_out):
    bf, f4 = 2, 4
    # per-layer streamed weights (bf16) + biases / LN params (f32)
    w = (D * 3 * inner * bf + 4 * D * f4
         + D * F * bf + F * f4 + F * D * bf + D * f4)
    if project_out:
        w += inner * D * bf + D * f4
    streamed = 2 * w                                  # double-buffered
    io = 2 * 2 * (Bb * N * D * f4)                    # h0 + out blocks, 2 bufs
    scratch = Bb * N * D * f4                         # residual stream
    acts = (Bb * N * (3 * inner + F + 2 * D) * f4     # qkv / f1 / misc f32
            + 2 * Bb * n_heads * N * N * f4)          # dots + exp (worst case)
    est = streamed + io + scratch + acts + (4 << 20)
    # 56 MiB ceiling keeps headroom under v7x's 64 MiB physical VMEM while
    # still raising v5e's 16 MiB default scoped limit.
    return int(min(max(est, 32 << 20), 56 << 20))


def vit_forward(x, t, params, cfg):
    B, C, H, W = x.shape
    p = cfg["patch_size"]
    hg, wg = H // p, W // p
    N = hg * wg
    Pd = C * p * p
    D = cfg["d_model"]
    depth = cfg["depth"]
    nh, dh = cfg["n_heads"], cfg["dim_head"]
    inner = nh * dh
    F = cfg["ffwd_dim"]
    project_out = not (nh == 1 and dh == D)
    bf16 = jnp.bfloat16

    # ---- hoisted (one-shot per image) XLA math: patch embed + pos + time ----
    xp = x.reshape(B, C, hg, p, wg, p).transpose(0, 2, 4, 3, 5, 1).reshape(B, N, Pd)
    with jax.default_matmul_precision("highest"):
        te = _time_features(t, D)
        t1 = jax.nn.gelu(te @ params["time_w1"] + params["time_b1"][0],
                         approximate=False)
        t2 = t1 @ params["time_w2"] + params["time_b2"][0]
        h0 = xp @ params["patch_w"] + params["patch_b"][0]
    h0 = (h0 + params["pos_emb"][None] + t2[:, None, :]).astype(jnp.float32)

    # ---- per-layer weight prep: fused QKV (Q pre-scaled), bf16 MXU operands --
    scale = 1.0 / math.sqrt(dh)
    qkv_w = params["qkv_w"]                                        # (depth, D, 3*inner)
    wqkv = jnp.concatenate([qkv_w[:, :, :inner] * scale,
                            qkv_w[:, :, inner:]], axis=-1).astype(bf16)
    wo = params["out_w"].astype(bf16)                              # (depth, inner, D)
    ob = params["out_b"].reshape(depth, 1, D)
    ln1g = params["ln1_g"].reshape(depth, 1, D)
    ln1b = params["ln1_b"].reshape(depth, 1, D)
    ln2g = params["ln2_g"].reshape(depth, 1, D)
    ln2b = params["ln2_b"].reshape(depth, 1, D)
    fw1 = params["ff_w1"].astype(bf16)                             # (depth, D, F)
    fb1 = params["ff_b1"].reshape(depth, 1, F)
    fw2 = params["ff_w2"].astype(bf16)                             # (depth, F, D)
    fb2 = params["ff_b2"].reshape(depth, 1, D)

    Bb = _pick_batch_block(B)

    def per_batch(block):
        return pl.BlockSpec(block, lambda b, l: (b, 0, 0))

    def per_layer(block):
        n_extra = len(block) - 1
        return pl.BlockSpec(block, lambda b, l: (l,) + (0,) * n_extra)

    kernel = partial(transformer_kernel, n_heads=nh, dim_head=dh,
                     project_out=project_out, bb=Bb, n_tokens=N)

    in_specs = [per_batch((Bb, N, D)),                             # h0
                per_layer((None, 1, D)), per_layer((None, 1, D)),  # ln1 g, b
                per_layer((None, D, 3 * inner))]                   # fused wqkv
    inputs = [h0, ln1g, ln1b, wqkv]
    if project_out:
        in_specs += [per_layer((None, inner, D)), per_layer((None, 1, D))]
        inputs += [wo, ob]
    in_specs += [per_layer((None, 1, D)), per_layer((None, 1, D)),  # ln2 g, b
                 per_layer((None, D, F)), per_layer((None, 1, F)),  # fw1, fb1
                 per_layer((None, F, D)), per_layer((None, 1, D))]  # fw2, fb2
    inputs += [ln2g, ln2b, fw1, fb1, fw2, fb2]

    h_out = pl.pallas_call(
        kernel,
        out_shape=jax.ShapeDtypeStruct((B, N, D), jnp.float32),
        grid=(B // Bb, depth),
        in_specs=in_specs,
        out_specs=per_batch((Bb, N, D)),
        scratch_shapes=[pltpu.VMEM((Bb * N, D), jnp.float32)],
        compiler_params=pltpu.CompilerParams(
            dimension_semantics=("parallel", "arbitrary"),
            vmem_limit_bytes=_vmem_limit_bytes(Bb, N, D, F, inner, nh, project_out)),
    )(*inputs)

    # ---- hoisted to_image projection + un-patch (exact f32) ------------------
    with jax.default_matmul_precision("highest"):
        y = h_out @ params["img_w"] + params["img_b"][0]
    y = y.reshape(B, hg, wg, p, p, C).transpose(0, 5, 1, 3, 2, 4)
    return y.reshape(B, C, H, W)


# -------------------------- params + reference -------------------------------


def init_params(key, cfg):
    D = cfg["d_model"]
    depth = cfg["depth"]
    F = cfg["ffwd_dim"]
    inner = cfg["n_heads"] * cfg["dim_head"]
    patch_dim = cfg["n_channels"] * cfg["patch_size"] ** 2
    N = (cfg["image_size"] // cfg["patch_size"]) ** 2

    ks = jax.random.split(key, 20)
    std = 0.02

    def nrm(k, shape, s=std):
        return (s * jax.random.normal(k, shape)).astype(jnp.float32)

    return dict(
        patch_w=nrm(ks[0], (patch_dim, D)),
        patch_b=nrm(ks[1], (1, D)),
        pos_emb=jax.random.normal(ks[2], (N, D), jnp.float32),
        time_w1=nrm(ks[3], (D // 4, D)),
        time_b1=nrm(ks[4], (1, D)),
        time_w2=nrm(ks[5], (D, D)),
        time_b2=nrm(ks[6], (1, D)),
        ln1_g=jnp.ones((depth, D), jnp.float32),
        ln1_b=jnp.zeros((depth, D), jnp.float32),
        qkv_w=nrm(ks[7], (depth, D, 3 * inner)),
        out_w=nrm(ks[8], (depth, inner, D)),
        out_b=nrm(ks[9], (depth, D)),
        ln2_g=jnp.ones((depth, D), jnp.float32),
        ln2_b=jnp.zeros((depth, D), jnp.float32),
        ff_w1=nrm(ks[10], (depth, D, F)),
        ff_b1=nrm(ks[11], (depth, F)),
        ff_w2=nrm(ks[12], (depth, F, D)),
        ff_b2=nrm(ks[13], (depth, D)),
        img_w=nrm(ks[14], (D, patch_dim)),
        img_b=nrm(ks[15], (1, patch_dim)),
    )


def _ln_ref(x, g, b, eps=1e-5):
    mu = jnp.mean(x, axis=-1, keepdims=True)
    var = jnp.mean((x - mu) ** 2, axis=-1, keepdims=True)
    return (x - mu) / jnp.sqrt(var + eps) * g + b


def _vit_reference_impl(x, t, params, cfg):
    B, C, H, W = x.shape
    p = cfg["patch_size"]
    hg, wg = H // p, W // p
    N = hg * wg
    Pd = C * p * p
    D = cfg["d_model"]
    nh, dh = cfg["n_heads"], cfg["dim_head"]
    inner = nh * dh
    project_out = not (nh == 1 and dh == D)
    gelu = lambda z: jax.nn.gelu(z, approximate=False)

    xp = x.reshape(B, C, hg, p, wg, p).transpose(0, 2, 4, 3, 5, 1).reshape(B, N, Pd)
    h = xp @ params["patch_w"] + params["patch_b"][0]
    h = h + params["pos_emb"][None]

    te = _time_features(t, D)
    t1 = gelu(te @ params["time_w1"] + params["time_b1"][0])
    t2 = t1 @ params["time_w2"] + params["time_b2"][0]
    h = h + t2[:, None, :]

    scale = 1.0 / math.sqrt(dh)
    for l in range(cfg["depth"]):
        xn = _ln_ref(h, params["ln1_g"][l], params["ln1_b"][l])
        qkv = xn @ params["qkv_w"][l]
        q, k, v = jnp.split(qkv, 3, axis=-1)
        q = q.reshape(B, N, nh, dh).transpose(0, 2, 1, 3)
        k = k.reshape(B, N, nh, dh).transpose(0, 2, 1, 3)
        v = v.reshape(B, N, nh, dh).transpose(0, 2, 1, 3)
        dots = jnp.einsum("bhqd,bhkd->bhqk", q, k) * scale
        attn = jax.nn.softmax(dots, axis=-1)
        o = jnp.einsum("bhqk,bhkd->bhqd", attn, v).transpose(0, 2, 1, 3).reshape(B, N, inner)
        if project_out:
            o = o @ params["out_w"][l] + params["out_b"][l]
        h = h + o
        xn = _ln_ref(h, params["ln2_g"][l], params["ln2_b"][l])
        f = gelu(xn @ params["ff_w1"][l] + params["ff_b1"][l])
        f = f @ params["ff_w2"][l] + params["ff_b2"][l]
        h = h + f

    y = h @ params["img_w"] + params["img_b"][0]
    y = y.reshape(B, hg, wg, p, p, C).transpose(0, 5, 1, 3, 2, 4).reshape(B, C, H, W)
    return y


def vit_reference(x, t, params, cfg):
    """Pure-JAX f32 reference mirroring the PyTorch forward (dropout = identity)."""
    with jax.default_matmul_precision("highest"):
        return _vit_reference_impl(x, t, params, cfg)


# --------------------------------- main --------------------------------------

if __name__ == "__main__":
    cfg = dict(
        image_size=16, patch_size=4, d_model=32, depth=2, n_heads=4,
        ffwd_dim=64, n_channels=4, dim_head=8, dropout=0.0,
    )
    key = jax.random.PRNGKey(0)
    kx, kt, kp = jax.random.split(key, 3)
    x = jax.random.normal(kx, (2, cfg["n_channels"], cfg["image_size"], cfg["image_size"]),
                          jnp.float32)
    t = jax.random.uniform(kt, (2,), jnp.float32, 0.0, 100.0)
    params = init_params(kp, cfg)

    y = vit_forward(x, t, params, cfg)
    y = jax.block_until_ready(y)
    assert y.shape == x.shape and y.dtype == jnp.float32

    y_ref = vit_reference(x, t, params, cfg)
    err = float(jnp.max(jnp.abs(y - y_ref)))
    assert err < 1e-2, f"kernel/reference mismatch: max abs err = {err}"

    print("KERNEL_OK")
</pallas_src>

<mosaic_0001>
module attributes {stable_mosaic.version = 11 : i64} {
  func.func @transformer_kernel(%arg0: i32, %arg1: i32, %arg2: memref<1x16x32xf32, #tpu.memory_space<vmem>>, %arg3: memref<1x1x32xf32, #tpu.memory_space<vmem>>, %arg4: memref<1x1x32xf32, #tpu.memory_space<vmem>>, %arg5: memref<1x32x96xbf16, #tpu.memory_space<vmem>>, %arg6: memref<1x32x32xbf16, #tpu.memory_space<vmem>>, %arg7: memref<1x1x32xf32, #tpu.memory_space<vmem>>, %arg8: memref<1x1x32xf32, #tpu.memory_space<vmem>>, %arg9: memref<1x1x32xf32, #tpu.memory_space<vmem>>, %arg10: memref<1x32x64xbf16, #tpu.memory_space<vmem>>, %arg11: memref<1x1x64xf32, #tpu.memory_space<vmem>>, %arg12: memref<1x64x32xbf16, #tpu.memory_space<vmem>>, %arg13: memref<1x1x32xf32, #tpu.memory_space<vmem>>, %arg14: memref<1x16x32xf32, #tpu.memory_space<vmem>>, %arg15: memref<16x32xf32, #tpu.memory_space<vmem>>) attributes {dimension_semantics = [#tpu.dimension_semantics<parallel>, #tpu.dimension_semantics<arbitrary>], iteration_bounds = array<i64: 2, 2>, scalar_prefetch = 0 : i64, scratch_operands = 1 : i64, tpu.core_type = #tpu.core_type<tc>, window_params = [{transform_indices = @transform_0, window_bounds = array<i64: 1, 16, 32>}, {transform_indices = @transform_1, window_bounds = array<i64: 1, 1, 32>}, {transform_indices = @transform_2, window_bounds = array<i64: 1, 1, 32>}, {transform_indices = @transform_3, window_bounds = array<i64: 1, 32, 96>}, {transform_indices = @transform_4, window_bounds = array<i64: 1, 32, 32>}, {transform_indices = @transform_5, window_bounds = array<i64: 1, 1, 32>}, {transform_indices = @transform_6, window_bounds = array<i64: 1, 1, 32>}, {transform_indices = @transform_7, window_bounds = array<i64: 1, 1, 32>}, {transform_indices = @transform_8, window_bounds = array<i64: 1, 32, 64>}, {transform_indices = @transform_9, window_bounds = array<i64: 1, 1, 64>}, {transform_indices = @transform_10, window_bounds = array<i64: 1, 64, 32>}, {transform_indices = @transform_11, window_bounds = array<i64: 1, 1, 32>}, {transform_indices = @transform_12, window_bounds = array<i64: 1, 16, 32>}]} {
    %c0_i32 = arith.constant 0 : i32
    %0 = arith.cmpi eq, %arg1, %c0_i32 : i32
    %1 = arith.extui %0 : i1 to i32
    %c0_i32_0 = arith.constant 0 : i32
    %2 = arith.cmpi ne, %1, %c0_i32_0 : i32
    scf.if %2 {
      %c0_71 = arith.constant 0 : index
      %c0_72 = arith.constant 0 : index
      %c0_73 = arith.constant 0 : index
      %192 = vector.load %arg2[%c0_71, %c0_72, %c0_73] : memref<1x16x32xf32, #tpu.memory_space<vmem>>, vector<1x16x32xf32>
      %193 = vector.shape_cast %192 : vector<1x16x32xf32> to vector<16x32xf32>
      %c0_74 = arith.constant 0 : index
      %c0_75 = arith.constant 0 : index
      %194 = vector.load %arg15[%c0_74, %c0_75] : memref<16x32xf32, #tpu.memory_space<vmem>>, vector<16x32xf32>
      tpu.vector_store %arg15[%c0_74, %c0_75], %193 {strides = array<i32>} : memref<16x32xf32, #tpu.memory_space<vmem>>, vector<16x32xf32>,
    } else {
    }
    %c0 = arith.constant 0 : index
    %c0_1 = arith.constant 0 : index
    %3 = vector.load %arg15[%c0, %c0_1] : memref<16x32xf32, #tpu.memory_space<vmem>>, vector<16x32xf32>
    %c0_2 = arith.constant 0 : index
    %c0_3 = arith.constant 0 : index
    %c0_4 = arith.constant 0 : index
    %4 = vector.load %arg3[%c0_2, %c0_3, %c0_4] : memref<1x1x32xf32, #tpu.memory_space<vmem>>, vector<1x1x32xf32>
    %5 = vector.shape_cast %4 : vector<1x1x32xf32> to vector<1x32xf32>
    %c0_5 = arith.constant 0 : index
    %c0_6 = arith.constant 0 : index
    %c0_7 = arith.constant 0 : index
    %6 = vector.load %arg4[%c0_5, %c0_6, %c0_7] : memref<1x1x32xf32, #tpu.memory_space<vmem>>, vector<1x1x32xf32>
    %7 = vector.shape_cast %6 : vector<1x1x32xf32> to vector<1x32xf32>
    %cst = arith.constant dense<0.000000e+00> : vector<16xf32>
    %8 = vector.multi_reduction <add>, %3, %cst [1] : vector<16x32xf32> to vector<16xf32>
    %9 = vector.shape_cast %8 : vector<16xf32> to vector<16x1xf32>
    %cst_8 = arith.constant 3.200000e+01 : f32
    %10 = vector.broadcast %cst_8 : f32 to vector<16x1xf32>
    %11 = arith.divf %9, %10 : vector<16x1xf32>
    %12 = vector.broadcast %11 : vector<16x1xf32> to vector<16x32xf32>
    %13 = arith.subf %3, %12 : vector<16x32xf32>
    %14 = arith.mulf %13, %13 : vector<16x32xf32>
    %cst_9 = arith.constant dense<0.000000e+00> : vector<16xf32>
    %15 = vector.multi_reduction <add>, %14, %cst_9 [1] : vector<16x32xf32> to vector<16xf32>
    %16 = vector.shape_cast %15 : vector<16xf32> to vector<16x1xf32>
    %cst_10 = arith.constant 3.200000e+01 : f32
    %17 = vector.broadcast %cst_10 : f32 to vector<16x1xf32>
    %18 = arith.divf %16, %17 : vector<16x1xf32>
    %cst_11 = arith.constant 9.99999974E-6 : f32
    %19 = vector.broadcast %cst_11 : f32 to vector<16x1xf32>
    %20 = arith.addf %18, %19 : vector<16x1xf32>
    %21 = math.rsqrt %20 : vector<16x1xf32>
    %22 = vector.broadcast %21 : vector<16x1xf32> to vector<16x32xf32>
    %23 = arith.mulf %13, %22 : vector<16x32xf32>
    %24 = vector.broadcast %5 : vector<1x32xf32> to vector<16x32xf32>
    %25 = arith.mulf %23, %24 : vector<16x32xf32>
    %26 = vector.broadcast %7 : vector<1x32xf32> to vector<16x32xf32>
    %27 = arith.addf %25, %26 : vector<16x32xf32>
    %28 = arith.truncf %27 : vector<16x32xf32> to vector<16x32xbf16>
    %c0_12 = arith.constant 0 : index
    %c0_13 = arith.constant 0 : index
    %c0_14 = arith.constant 0 : index
    %29 = vector.load %arg5[%c0_12, %c0_13, %c0_14] : memref<1x32x96xbf16, #tpu.memory_space<vmem>>, vector<1x32x96xbf16>
    %30 = vector.shape_cast %29 : vector<1x32x96xbf16> to vector<32x96xbf16>
    %cst_15 = arith.constant dense<0.000000e+00> : vector<16x96xf32>
    %31 = tpu.matmul %28, %30, %cst_15 {dimension_numbers = #tpu.dot_dimension_numbers<[1], [0], [0], [1], [0, 0, 1, 1], [], []>} : vector<16x32xbf16>, vector<32x96xbf16>, vector<16x96xf32> -> vector<16x96xf32>
    %32 = vector.extract_strided_slice %31 {offsets = [0, 0], sizes = [16, 8], strides = [1, 1]} : vector<16x96xf32> to vector<16x8xf32>
    %33 = vector.shape_cast %32 : vector<16x8xf32> to vector<1x16x8xf32>
    %34 = arith.truncf %33 : vector<1x16x8xf32> to vector<1x16x8xbf16>
    %35 = vector.extract_strided_slice %31 {offsets = [0, 32], sizes = [16, 8], strides = [1, 1]} : vector<16x96xf32> to vector<16x8xf32>
    %36 = vector.shape_cast %35 : vector<16x8xf32> to vector<1x16x8xf32>
    %37 = arith.truncf %36 : vector<1x16x8xf32> to vector<1x16x8xbf16>
    %38 = vector.extract_strided_slice %31 {offsets = [0, 64], sizes = [16, 8], strides = [1, 1]} : vector<16x96xf32> to vector<16x8xf32>
    %39 = vector.shape_cast %38 : vector<16x8xf32> to vector<1x16x8xf32>
    %40 = arith.truncf %39 : vector<1x16x8xf32> to vector<1x16x8xbf16>
    "tpu.trace_start"() <{level = 10 : i32, message = "bqe,bke->bqk"}> : () -> ()
    %cst_16 = arith.constant dense<0.000000e+00> : vector<1x16x16xf32>
    %41 = tpu.matmul %34, %37, %cst_16 {dimension_numbers = #tpu.dot_dimension_numbers<[2], [2], [1], [1], [0, 0, 0, 1, 1, 1], [0], [0]>} : vector<1x16x8xbf16>, vector<1x16x8xbf16>, vector<1x16x16xf32> -> vector<1x16x16xf32>
    "tpu.trace_stop"() : () -> ()
    %cst_17 = arith.constant dense<0xFF800000> : vector<1x16xf32>
    %42 = vector.multi_reduction <maximumf>, %41, %cst_17 [2] : vector<1x16x16xf32> to vector<1x16xf32>
    %43 = vector.shape_cast %42 : vector<1x16xf32> to vector<1x16x1xf32>
    %44 = vector.broadcast %43 : vector<1x16x1xf32> to vector<1x16x16xf32>
    %45 = arith.subf %41, %44 : vector<1x16x16xf32>
    %46 = math.exp %45 : vector<1x16x16xf32>
    %cst_18 = arith.constant dense<0.000000e+00> : vector<1x16xf32>
    %47 = vector.multi_reduction <add>, %46, %cst_18 [2] : vector<1x16x16xf32> to vector<1x16xf32>
    %48 = vector.shape_cast %47 : vector<1x16xf32> to vector<1x16x1xf32>
    %49 = tpu.reciprocal %48 {approx = true} : vector<1x16x1xf32> -> vector<1x16x1xf32>
    %50 = vector.broadcast %49 : vector<1x16x1xf32> to vector<1x16x16xf32>
    %51 = arith.mulf %46, %50 : vector<1x16x16xf32>
    %52 = arith.truncf %51 : vector<1x16x16xf32> to vector<1x16x16xbf16>
    "tpu.trace_start"() <{level = 10 : i32, message = "bqk,bke->bqe"}> : () -> ()
    %cst_19 = arith.constant dense<0.000000e+00> : vector<1x16x8xf32>
    %53 = tpu.matmul %52, %40, %cst_19 {dimension_numbers = #tpu.dot_dimension_numbers<[2], [1], [1], [2], [0, 0, 0, 1, 1, 2], [0], [0]>} : vector<1x16x16xbf16>, vector<1x16x8xbf16>, vector<1x16x8xf32> -> vector<1x16x8xf32>
    "tpu.trace_stop"() : () -> ()
    %54 = vector.shape_cast %53 : vector<1x16x8xf32> to vector<16x8xf32>
    %55 = vector.extract_strided_slice %31 {offsets = [0, 8], sizes = [16, 8], strides = [1, 1]} : vector<16x96xf32> to vector<16x8xf32>
    %56 = vector.shape_cast %55 : vector<16x8xf32> to vector<1x16x8xf32>
    %57 = arith.truncf %56 : vector<1x16x8xf32> to vector<1x16x8xbf16>
    %58 = vector.extract_strided_slice %31 {offsets = [0, 40], sizes = [16, 8], strides = [1, 1]} : vector<16x96xf32> to vector<16x8xf32>
    %59 = vector.shape_cast %58 : vector<16x8xf32> to vector<1x16x8xf32>
    %60 = arith.truncf %59 : vector<1x16x8xf32> to vector<1x16x8xbf16>
    %61 = vector.extract_strided_slice %31 {offsets = [0, 72], sizes = [16, 8], strides = [1, 1]} : vector<16x96xf32> to vector<16x8xf32>
    %62 = vector.shape_cast %61 : vector<16x8xf32> to vector<1x16x8xf32>
    %63 = arith.truncf %62 : vector<1x16x8xf32> to vector<1x16x8xbf16>
    "tpu.trace_start"() <{level = 10 : i32, message = "bqe,bke->bqk"}> : () -> ()
    %cst_20 = arith.constant dense<0.000000e+00> : vector<1x16x16xf32>
    %64 = tpu.matmul %57, %60, %cst_20 {dimension_numbers = #tpu.dot_dimension_numbers<[2], [2], [1], [1], [0, 0, 0, 1, 1, 1], [0], [0]>} : vector<1x16x8xbf16>, vector<1x16x8xbf16>, vector<1x16x16xf32> -> vector<1x16x16xf32>
    "tpu.trace_stop"() : () -> ()
    %cst_21 = arith.constant dense<0xFF800000> : vector<1x16xf32>
    %65 = vector.multi_reduction <maximumf>, %64, %cst_21 [2] : vector<1x16x16xf32> to vector<1x16xf32>
    %66 = vector.shape_cast %65 : vector<1x16xf32> to vector<1x16x1xf32>
    %67 = vector.broadcast %66 : vector<1x16x1xf32> to vector<1x16x16xf32>
    %68 = arith.subf %64, %67 : vector<1x16x16xf32>
    %69 = math.exp %68 : vector<1x16x16xf32>
    %cst_22 = arith.constant dense<0.000000e+00> : vector<1x16xf32>
    %70 = vector.multi_reduction <add>, %69, %cst_22 [2] : vector<1x16x16xf32> to vector<1x16xf32>
    %71 = vector.shape_cast %70 : vector<1x16xf32> to vector<1x16x1xf32>
    %72 = tpu.reciprocal %71 {approx = true} : vector<1x16x1xf32> -> vector<1x16x1xf32>
    %73 = vector.broadcast %72 : vector<1x16x1xf32> to vector<1x16x16xf32>
    %74 = arith.mulf %69, %73 : vector<1x16x16xf32>
    %75 = arith.truncf %74 : vector<1x16x16xf32> to vector<1x16x16xbf16>
    "tpu.trace_start"() <{level = 10 : i32, message = "bqk,bke->bqe"}> : () -> ()
    %cst_23 = arith.constant dense<0.000000e+00> : vector<1x16x8xf32>
    %76 = tpu.matmul %75, %63, %cst_23 {dimension_numbers = #tpu.dot_dimension_numbers<[2], [1], [1], [2], [0, 0, 0, 1, 1, 2], [0], [0]>} : vector<1x16x16xbf16>, vector<1x16x8xbf16>, vector<1x16x8xf32> -> vector<1x16x8xf32>
    "tpu.trace_stop"() : () -> ()
    %77 = vector.shape_cast %76 : vector<1x16x8xf32> to vector<16x8xf32>
    %78 = vector.extract_strided_slice %31 {offsets = [0, 16], sizes = [16, 8], strides = [1, 1]} : vector<16x96xf32> to vector<16x8xf32>
    %79 = vector.shape_cast %78 : vector<16x8xf32> to vector<1x16x8xf32>
    %80 = arith.truncf %79 : vector<1x16x8xf32> to vector<1x16x8xbf16>
    %81 = vector.extract_strided_slice %31 {offsets = [0, 48], sizes = [16, 8], strides = [1, 1]} : vector<16x96xf32> to vector<16x8xf32>
    %82 = vector.shape_cast %81 : vector<16x8xf32> to vector<1x16x8xf32>
    %83 = arith.truncf %82 : vector<1x16x8xf32> to vector<1x16x8xbf16>
    %84 = vector.extract_strided_slice %31 {offsets = [0, 80], sizes = [16, 8], strides = [1, 1]} : vector<16x96xf32> to vector<16x8xf32>
    %85 = vector.shape_cast %84 : vector<16x8xf32> to vector<1x16x8xf32>
    %86 = arith.truncf %85 : vector<1x16x8xf32> to vector<1x16x8xbf16>
    "tpu.trace_start"() <{level = 10 : i32, message = "bqe,bke->bqk"}> : () -> ()
    %cst_24 = arith.constant dense<0.000000e+00> : vector<1x16x16xf32>
    %87 = tpu.matmul %80, %83, %cst_24 {dimension_numbers = #tpu.dot_dimension_numbers<[2], [2], [1], [1], [0, 0, 0, 1, 1, 1], [0], [0]>} : vector<1x16x8xbf16>, vector<1x16x8xbf16>, vector<1x16x16xf32> -> vector<1x16x16xf32>
    "tpu.trace_stop"() : () -> ()
    %cst_25 = arith.constant dense<0xFF800000> : vector<1x16xf32>
    %88 = vector.multi_reduction <maximumf>, %87, %cst_25 [2] : vector<1x16x16xf32> to vector<1x16xf32>
    %89 = vector.shape_cast %88 : vector<1x16xf32> to vector<1x16x1xf32>
    %90 = vector.broadcast %89 : vector<1x16x1xf32> to vector<1x16x16xf32>
    %91 = arith.subf %87, %90 : vector<1x16x16xf32>
    %92 = math.exp %91 : vector<1x16x16xf32>
    %cst_26 = arith.constant dense<0.000000e+00> : vector<1x16xf32>
    %93 = vector.multi_reduction <add>, %92, %cst_26 [2] : vector<1x16x16xf32> to vector<1x16xf32>
    %94 = vector.shape_cast %93 : vector<1x16xf32> to vector<1x16x1xf32>
    %95 = tpu.reciprocal %94 {approx = true} : vector<1x16x1xf32> -> vector<1x16x1xf32>
    %96 = vector.broadcast %95 : vector<1x16x1xf32> to vector<1x16x16xf32>
    %97 = arith.mulf %92, %96 : vector<1x16x16xf32>
    %98 = arith.truncf %97 : vector<1x16x16xf32> to vector<1x16x16xbf16>
    "tpu.trace_start"() <{level = 10 : i32, message = "bqk,bke->bqe"}> : () -> ()
    %cst_27 = arith.constant dense<0.000000e+00> : vector<1x16x8xf32>
    %99 = tpu.matmul %98, %86, %cst_27 {dimension_numbers = #tpu.dot_dimension_numbers<[2], [1], [1], [2], [0, 0, 0, 1, 1, 2], [0], [0]>} : vector<1x16x16xbf16>, vector<1x16x8xbf16>, vector<1x16x8xf32> -> vector<1x16x8xf32>
    "tpu.trace_stop"() : () -> ()
    %100 = vector.shape_cast %99 : vector<1x16x8xf32> to vector<16x8xf32>
    %101 = vector.extract_strided_slice %31 {offsets = [0, 24], sizes = [16, 8], strides = [1, 1]} : vector<16x96xf32> to vector<16x8xf32>
    %102 = vector.shape_cast %101 : vector<16x8xf32> to vector<1x16x8xf32>
    %103 = arith.truncf %102 : vector<1x16x8xf32> to vector<1x16x8xbf16>
    %104 = vector.extract_strided_slice %31 {offsets = [0, 56], sizes = [16, 8], strides = [1, 1]} : vector<16x96xf32> to vector<16x8xf32>
    %105 = vector.shape_cast %104 : vector<16x8xf32> to vector<1x16x8xf32>
    %106 = arith.truncf %105 : vector<1x16x8xf32> to vector<1x16x8xbf16>
    %107 = vector.extract_strided_slice %31 {offsets = [0, 88], sizes = [16, 8], strides = [1, 1]} : vector<16x96xf32> to vector<16x8xf32>
    %108 = vector.shape_cast %107 : vector<16x8xf32> to vector<1x16x8xf32>
    %109 = arith.truncf %108 : vector<1x16x8xf32> to vector<1x16x8xbf16>
    "tpu.trace_start"() <{level = 10 : i32, message = "bqe,bke->bqk"}> : () -> ()
    %cst_28 = arith.constant dense<0.000000e+00> : vector<1x16x16xf32>
    %110 = tpu.matmul %103, %106, %cst_28 {dimension_numbers = #tpu.dot_dimension_numbers<[2], [2], [1], [1], [0, 0, 0, 1, 1, 1], [0], [0]>} : vector<1x16x8xbf16>, vector<1x16x8xbf16>, vector<1x16x16xf32> -> vector<1x16x16xf32>
    "tpu.trace_stop"() : () -> ()
    %cst_29 = arith.constant dense<0xFF800000> : vector<1x16xf32>
    %111 = vector.multi_reduction <maximumf>, %110, %cst_29 [2] : vector<1x16x16xf32> to vector<1x16xf32>
    %112 = vector.shape_cast %111 : vector<1x16xf32> to vector<1x16x1xf32>
    %113 = vector.broadcast %112 : vector<1x16x1xf32> to vector<1x16x16xf32>
    %114 = arith.subf %110, %113 : vector<1x16x16xf32>
    %115 = math.exp %114 : vector<1x16x16xf32>
    %cst_30 = arith.constant dense<0.000000e+00> : vector<1x16xf32>
    %116 = vector.multi_reduction <add>, %115, %cst_30 [2] : vector<1x16x16xf32> to vector<1x16xf32>
    %117 = vector.shape_cast %116 : vector<1x16xf32> to vector<1x16x1xf32>
    %118 = tpu.reciprocal %117 {approx = true} : vector<1x16x1xf32> -> vector<1x16x1xf32>
    %119 = vector.broadcast %118 : vector<1x16x1xf32> to vector<1x16x16xf32>
    %120 = arith.mulf %115, %119 : vector<1x16x16xf32>
    %121 = arith.truncf %120 : vector<1x16x16xf32> to vector<1x16x16xbf16>
    "tpu.trace_start"() <{level = 10 : i32, message = "bqk,bke->bqe"}> : () -> ()
    %cst_31 = arith.constant dense<0.000000e+00> : vector<1x16x8xf32>
    %122 = tpu.matmul %121, %109, %cst_31 {dimension_numbers = #tpu.dot_dimension_numbers<[2], [1], [1], [2], [0, 0, 0, 1, 1, 2], [0], [0]>} : vector<1x16x16xbf16>, vector<1x16x8xbf16>, vector<1x16x8xf32> -> vector<1x16x8xf32>
    "tpu.trace_stop"() : () -> ()
    %123 = vector.shape_cast %122 : vector<1x16x8xf32> to vector<16x8xf32>
    %124 = tpu.concatenate %54, %77, %100, %123 in 1 : vector<16x8xf32>, vector<16x8xf32>, vector<16x8xf32>, vector<16x8xf32> -> vector<16x32xf32>
    %125 = arith.truncf %124 : vector<16x32xf32> to vector<16x32xbf16>
    %c0_32 = arith.constant 0 : index
    %c0_33 = arith.constant 0 : index
    %c0_34 = arith.constant 0 : index
    %126 = vector.load %arg6[%c0_32, %c0_33, %c0_34] : memref<1x32x32xbf16, #tpu.memory_space<vmem>>, vector<1x32x32xbf16>
    %127 = vector.shape_cast %126 : vector<1x32x32xbf16> to vector<32x32xbf16>
    %cst_35 = arith.constant dense<0.000000e+00> : vector<16x32xf32>
    %128 = tpu.matmul %125, %127, %cst_35 {dimension_numbers = #tpu.dot_dimension_numbers<[1], [0], [0], [1], [0, 0, 1, 1], [], []>} : vector<16x32xbf16>, vector<32x32xbf16>, vector<16x32xf32> -> vector<16x32xf32>
    %c0_36 = arith.constant 0 : index
    %c0_37 = arith.constant 0 : index
    %c0_38 = arith.constant 0 : index
    %129 = vector.load %arg7[%c0_36, %c0_37, %c0_38] : memref<1x1x32xf32, #tpu.memory_space<vmem>>, vector<1x1x32xf32>
    %130 = vector.shape_cast %129 : vector<1x1x32xf32> to vector<1x32xf32>
    %131 = vector.broadcast %130 : vector<1x32xf32> to vector<16x32xf32>
    %132 = arith.addf %128, %131 : vector<16x32xf32>
    %133 = arith.addf %3, %132 : vector<16x32xf32>
    %c0_39 = arith.constant 0 : index
    %c0_40 = arith.constant 0 : index
    %c0_41 = arith.constant 0 : index
    %134 = vector.load %arg8[%c0_39, %c0_40, %c0_41] : memref<1x1x32xf32, #tpu.memory_space<vmem>>, vector<1x1x32xf32>
    %135 = vector.shape_cast %134 : vector<1x1x32xf32> to vector<1x32xf32>
    %c0_42 = arith.constant 0 : index
    %c0_43 = arith.constant 0 : index
    %c0_44 = arith.constant 0 : index
    %136 = vector.load %arg9[%c0_42, %c0_43, %c0_44] : memref<1x1x32xf32, #tpu.memory_space<vmem>>, vector<1x1x32xf32>
    %137 = vector.shape_cast %136 : vector<1x1x32xf32> to vector<1x32xf32>
    %cst_45 = arith.constant dense<0.000000e+00> : vector<16xf32>
    %138 = vector.multi_reduction <add>, %133, %cst_45 [1] : vector<16x32xf32> to vector<16xf32>
    %139 = vector.shape_cast %138 : vector<16xf32> to vector<16x1xf32>
    %cst_46 = arith.constant 3.200000e+01 : f32
    %140 = vector.broadcast %cst_46 : f32 to vector<16x1xf32>
    %141 = arith.divf %139, %140 : vector<16x1xf32>
    %142 = vector.broadcast %141 : vector<16x1xf32> to vector<16x32xf32>
    %143 = arith.subf %133, %142 : vector<16x32xf32>
    %144 = arith.mulf %143, %143 : vector<16x32xf32>
    %cst_47 = arith.constant dense<0.000000e+00> : vector<16xf32>
    %145 = vector.multi_reduction <add>, %144, %cst_47 [1] : vector<16x32xf32> to vector<16xf32>
    %146 = vector.shape_cast %145 : vector<16xf32> to vector<16x1xf32>
    %cst_48 = arith.constant 3.200000e+01 : f32
    %147 = vector.broadcast %cst_48 : f32 to vector<16x1xf32>
    %148 = arith.divf %146, %147 : vector<16x1xf32>
    %cst_49 = arith.constant 9.99999974E-6 : f32
    %149 = vector.broadcast %cst_49 : f32 to vector<16x1xf32>
    %150 = arith.addf %148, %149 : vector<16x1xf32>
    %151 = math.rsqrt %150 : vector<16x1xf32>
    %152 = vector.broadcast %151 : vector<16x1xf32> to vector<16x32xf32>
    %153 = arith.mulf %143, %152 : vector<16x32xf32>
    %154 = vector.broadcast %135 : vector<1x32xf32> to vector<16x32xf32>
    %155 = arith.mulf %153, %154 : vector<16x32xf32>
    %156 = vector.broadcast %137 : vector<1x32xf32> to vector<16x32xf32>
    %157 = arith.addf %155, %156 : vector<16x32xf32>
    %158 = arith.truncf %157 : vector<16x32xf32> to vector<16x32xbf16>
    %c0_50 = arith.constant 0 : index
    %c0_51 = arith.constant 0 : index
    %c0_52 = arith.constant 0 : index
    %159 = vector.load %arg10[%c0_50, %c0_51, %c0_52] : memref<1x32x64xbf16, #tpu.memory_space<vmem>>, vector<1x32x64xbf16>
    %160 = vector.shape_cast %159 : vector<1x32x64xbf16> to vector<32x64xbf16>
    %cst_53 = arith.constant dense<0.000000e+00> : vector<16x64xf32>
    %161 = tpu.matmul %158, %160, %cst_53 {dimension_numbers = #tpu.dot_dimension_numbers<[1], [0], [0], [1], [0, 0, 1, 1], [], []>} : vector<16x32xbf16>, vector<32x64xbf16>, vector<16x64xf32> -> vector<16x64xf32>
    %c0_54 = arith.constant 0 : index
    %c0_55 = arith.constant 0 : index
    %c0_56 = arith.constant 0 : index
    %162 = vector.load %arg11[%c0_54, %c0_55, %c0_56] : memref<1x1x64xf32, #tpu.memory_space<vmem>>, vector<1x1x64xf32>
    %163 = vector.shape_cast %162 : vector<1x1x64xf32> to vector<1x64xf32>
    %164 = vector.broadcast %163 : vector<1x64xf32> to vector<16x64xf32>
    %165 = arith.addf %161, %164 : vector<16x64xf32>
    %cst_57 = arith.constant 5.000000e-01 : f32
    %166 = vector.broadcast %cst_57 : f32 to vector<16x64xf32>
    %167 = arith.mulf %166, %165 : vector<16x64xf32>
    %cst_58 = arith.constant 4.471500e-02 : f32
    %168 = vector.broadcast %cst_58 : f32 to vector<16x64xf32>
    %169 = arith.mulf %168, %165 : vector<16x64xf32>
    %170 = arith.mulf %169, %165 : vector<16x64xf32>
    %171 = arith.mulf %170, %165 : vector<16x64xf32>
    %172 = arith.addf %165, %171 : vector<16x64xf32>
    %cst_59 = arith.constant 0.797884583 : f32
    %173 = vector.broadcast %cst_59 : f32 to vector<16x64xf32>
    %174 = arith.mulf %173, %172 : vector<16x64xf32>
    %175 = math.tanh %174 : vector<16x64xf32>
    %cst_60 = arith.constant 1.000000e+00 : f32
    %176 = vector.broadcast %cst_60 : f32 to vector<16x64xf32>
    %177 = arith.addf %176, %175 : vector<16x64xf32>
    %178 = arith.mulf %167, %177 : vector<16x64xf32>
    %179 = arith.truncf %178 : vector<16x64xf32> to vector<16x64xbf16>
    %c0_61 = arith.constant 0 : index
    %c0_62 = arith.constant 0 : index
    %c0_63 = arith.constant 0 : index
    %180 = vector.load %arg12[%c0_61, %c0_62, %c0_63] : memref<1x64x32xbf16, #tpu.memory_space<vmem>>, vector<1x64x32xbf16>
    %181 = vector.shape_cast %180 : vector<1x64x32xbf16> to vector<64x32xbf16>
    %cst_64 = arith.constant dense<0.000000e+00> : vector<16x32xf32>
    %182 = tpu.matmul %179, %181, %cst_64 {dimension_numbers = #tpu.dot_dimension_numbers<[1], [0], [0], [1], [0, 0, 1, 1], [], []>} : vector<16x64xbf16>, vector<64x32xbf16>, vector<16x32xf32> -> vector<16x32xf32>
    %c0_65 = arith.constant 0 : index
    %c0_66 = arith.constant 0 : index
    %c0_67 = arith.constant 0 : index
    %183 = vector.load %arg13[%c0_65, %c0_66, %c0_67] : memref<1x1x32xf32, #tpu.memory_space<vmem>>, vector<1x1x32xf32>
    %184 = vector.shape_cast %183 : vector<1x1x32xf32> to vector<1x32xf32>
    %185 = vector.broadcast %184 : vector<1x32xf32> to vector<16x32xf32>
    %186 = arith.addf %182, %185 : vector<16x32xf32>
    %187 = arith.addf %133, %186 : vector<16x32xf32>
    %c0_68 = arith.constant 0 : index
    %c0_69 = arith.constant 0 : index
    %188 = vector.load %arg15[%c0_68, %c0_69] : memref<16x32xf32, #tpu.memory_space<vmem>>, vector<16x32xf32>
    tpu.vector_store %arg15[%c0_68, %c0_69], %187 {strides = array<i32>} : memref<16x32xf32, #tpu.memory_space<vmem>>, vector<16x32xf32>,
    %c1_i32 = arith.constant 1 : i32
    %189 = arith.cmpi eq, %arg1, %c1_i32 : i32
    %190 = arith.extui %189 : i1 to i32
    %c0_i32_70 = arith.constant 0 : i32
    %191 = arith.cmpi ne, %190, %c0_i32_70 : i32
    scf.if %191 {
      %192 = vector.shape_cast %187 : vector<16x32xf32> to vector<1x16x32xf32>
      %c0_71 = arith.constant 0 : index
      %c0_72 = arith.constant 0 : index
      %c0_73 = arith.constant 0 : index
      %193 = vector.load %arg14[%c0_71, %c0_72, %c0_73] : memref<1x16x32xf32, #tpu.memory_space<vmem>>, vector<1x16x32xf32>
      tpu.vector_store %arg14[%c0_71, %c0_72, %c0_73], %192 {strides = array<i32>} : memref<1x16x32xf32, #tpu.memory_space<vmem>>, vector<1x16x32xf32>,
    } else {
    }
    return
  }
  func.func @transform_0(%arg0: i32, %arg1: i32) -> (i32, i32, i32) {
    %c0_i32 = arith.constant 0 : i32
    %c0_i32_0 = arith.constant 0 : i32
    %c0_i32_1 = arith.constant 0 : i32
    return %arg0, %c0_i32, %c0_i32_0 : i32, i32, i32
  }
  func.func @transform_1(%arg0: i32, %arg1: i32) -> (i32, i32, i32) {
    %c0_i32 = arith.constant 0 : i32
    %c0_i32_0 = arith.constant 0 : i32
    %c0_i32_1 = arith.constant 0 : i32
    return %arg1, %c0_i32, %c0_i32_0 : i32, i32, i32
  }
  func.func @transform_2(%arg0: i32, %arg1: i32) -> (i32, i32, i32) {
    %c0_i32 = arith.constant 0 : i32
    %c0_i32_0 = arith.constant 0 : i32
    %c0_i32_1 = arith.constant 0 : i32
    return %arg1, %c0_i32, %c0_i32_0 : i32, i32, i32
  }
  func.func @transform_3(%arg0: i32, %arg1: i32) -> (i32, i32, i32) {
    %c0_i32 = arith.constant 0 : i32
    %c0_i32_0 = arith.constant 0 : i32
    %c0_i32_1 = arith.constant 0 : i32
    return %arg1, %c0_i32, %c0_i32_0 : i32, i32, i32
  }
  func.func @transform_4(%arg0: i32, %arg1: i32) -> (i32, i32, i32) {
    %c0_i32 = arith.constant 0 : i32
    %c0_i32_0 = arith.constant 0 : i32
    %c0_i32_1 = arith.constant 0 : i32
    return %arg1, %c0_i32, %c0_i32_0 : i32, i32, i32
  }
  func.func @transform_5(%arg0: i32, %arg1: i32) -> (i32, i32, i32) {
    %c0_i32 = arith.constant 0 : i32
    %c0_i32_0 = arith.constant 0 : i32
    %c0_i32_1 = arith.constant 0 : i32
    return %arg1, %c0_i32, %c0_i32_0 : i32, i32, i32
  }
  func.func @transform_6(%arg0: i32, %arg1: i32) -> (i32, i32, i32) {
    %c0_i32 = arith.constant 0 : i32
    %c0_i32_0 = arith.constant 0 : i32
    %c0_i32_1 = arith.constant 0 : i32
    return %arg1, %c0_i32, %c0_i32_0 : i32, i32, i32
  }
  func.func @transform_7(%arg0: i32, %arg1: i32) -> (i32, i32, i32) {
    %c0_i32 = arith.constant 0 : i32
    %c0_i32_0 = arith.constant 0 : i32
    %c0_i32_1 = arith.constant 0 : i32
    return %arg1, %c0_i32, %c0_i32_0 : i32, i32, i32
  }
  func.func @transform_8(%arg0: i32, %arg1: i32) -> (i32, i32, i32) {
    %c0_i32 = arith.constant 0 : i32
    %c0_i32_0 = arith.constant 0 : i32
    %c0_i32_1 = arith.constant 0 : i32
    return %arg1, %c0_i32, %c0_i32_0 : i32, i32, i32
  }
  func.func @transform_9(%arg0: i32, %arg1: i32) -> (i32, i32, i32) {
    %c0_i32 = arith.constant 0 : i32
    %c0_i32_0 = arith.constant 0 : i32
    %c0_i32_1 = arith.constant 0 : i32
    return %arg1, %c0_i32, %c0_i32_0 : i32, i32, i32
  }
  func.func @transform_10(%arg0: i32, %arg1: i32) -> (i32, i32, i32) {
    %c0_i32 = arith.constant 0 : i32
    %c0_i32_0 = arith.constant 0 : i32
    %c0_i32_1 = arith.constant 0 : i32
    return %arg1, %c0_i32, %c0_i32_0 : i32, i32, i32
  }
  func.func @transform_11(%arg0: i32, %arg1: i32) -> (i32, i32, i32) {
    %c0_i32 = arith.constant 0 : i32
    %c0_i32_0 = arith.constant 0 : i32
    %c0_i32_1 = arith.constant 0 : i32
    return %arg1, %c0_i32, %c0_i32_0 : i32, i32, i32
  }
  func.func @transform_12(%arg0: i32, %arg1: i32) -> (i32, i32, i32) {
    %c0_i32 = arith.constant 0 : i32
    %c0_i32_0 = arith.constant 0 : i32
    %c0_i32_1 = arith.constant 0 : i32
    return %arg0, %c0_i32, %c0_i32_0 : i32, i32, i32
  }
}

</mosaic_0001>

<bundles_post_ra>
// kernel: tpu_custom_call.1
= control target key start
LH: loop header
LB: loop body
LE: loop exit
PB: predicated region body
PF: predicated region fallthrough
CT: control target
= control target key end

     0   :  { %s2635_s0 = inlined_call_operand.vmem [shape: f32[2,16,32], index: 0, kind: input, shape index: {}]   ;;  %s2636_s1 = inlined_call_operand.hbm [shape: f32[2,1,32], index: 1, kind: input, shape index: {}]   ;;  %s2637_s2 = inlined_call_operand.hbm [shape: f32[2,1,32], index: 2, kind: input, shape index: {}]   ;;  %s2638_s3 = inlined_call_operand.vmem [shape: bf16[2,32,96], index: 3, kind: input, shape index: {}]   ;;  %s2639_s4 = inlined_call_operand.vmem [shape: bf16[2,32,32], index: 4, kind: input, shape index: {}]   ;;  %s2640_s5 = inlined_call_operand.vmem [shape: f32[2,1,32], index: 5, kind: input, shape index: {}]   ;;  %s2641_s6 = inlined_call_operand.vmem [shape: f32[2,1,32], index: 6, kind: input, shape index: {}]   ;;  %s2642_s7 = inlined_call_operand.hbm [shape: f32[2,1,32], index: 7, kind: input, shape index: {}]   ;;  %s2643_s8 = inlined_call_operand.hbm [shape: bf16[2,32,64], index: 8, kind: input, shape index: {}]   ;;  %s2644_s9 = inlined_call_operand.vmem [shape: f32[2,1,64], index: 9, kind: input, shape index: {}]   ;;  %s2645_s10 = inlined_call_operand.vmem [shape: bf16[2,64,32], index: 10, kind: input, shape index: {}]   ;;  %s2646_s11 = inlined_call_operand.vmem [shape: f32[2,1,32], index: 11, kind: input, shape index: {}]   ;;  %s2647_s12 = inlined_call_operand.hbm [shape: f32[2,16,32], index: 12, kind: output, shape index: {}]  }
   0x1   :  { %2663 = sst [smem:[#allocation29_spill]] %s2635_s0 }
   0x2   :  { %2664 = sst [smem:[#allocation30_spill]] %s2636_s1 }
   0x3   :  { %2665 = sst [smem:[#allocation31_spill]] %s2637_s2 }
   0x4   :  { %2666 = sst [smem:[#allocation32_spill]] %s2638_s3 }
   0x5   :  { %2667 = sst [smem:[#allocation33_spill]] %s2639_s4 }
   0x6   :  { %2668 = sst [smem:[#allocation34_spill]] %s2641_s6 }
   0x7   :  { %2669 = sst [smem:[#allocation35_spill]] %s2642_s7 }
   0x8   :  { %2670 = sst [smem:[#allocation36_spill]] %s2643_s8 }
   0x9   :  { %2671 = sst [smem:[#allocation37_spill]] %s2644_s9 }
   0xa   :  { %2672 = sst [smem:[#allocation38_spill]] %s2645_s10 }
   0xb   :  { %2673 = sst [smem:[#allocation39_spill]] %s2646_s11 }
   0xc   :  { %2674 = sst [smem:[#allocation40_spill]] %s2647_s12 }
   0xd   :  { %17 = vsyncpa [#allocation4], 0 }
   0xe   :  { %19 = vsyncpa [#allocation4 + $0x1], 0 }
   0xf   :  { %20 = vsyncpa [#allocation7], 0 }
  0x10   :  { %22 = vsyncpa [#allocation7 + $0x1], 0 }
  0x11   :  { %23 = vsyncpa [#allocation10], 0 }
  0x12   :  { %25 = vsyncpa [#allocation10 + $0x1], 0 }
  0x13   :  { %26 = vsyncpa [#allocation5], 0 }
  0x14   :  { %28 = vsyncpa [#allocation5 + $0x1], 0  ;;  %s2210_s21 = smov 0   ;;  %s2212_s22 = smov 0  }
  0x15   :  { %s2214_s23 = smov 0   ;;  %s2216_s24 = smov 0  }
  0x16   :  { %s2218_s25 = smov 0   ;;  %s2220_s26 = smov 0  }
  0x17   :  { %s2222_s27 = smov 0   ;;  %s2224_s28 = smov 0  }
  0x18   :  { %s2226_s29 = smov 0   ;;  %s2228_s30 = smov 0  }
  0x19   :  { %s2230_s13 = smov 0  }
  0x1a LB: > { %2675 = sst [smem:[#allocation16_spill]] %s2085_s21  ;;  %s2264_s14 = sadd.s32 4294967295, %s2125_s13   ;;  %s2125_s13 = sphi %s2230_s13, %s34_s13   ;;  %s2121_s30 = sphi %s2228_s30, %s2726_s30   ;;  %s2117_s29 = sphi %s2226_s29, %s2725_s29   ;;  %s2113_s28 = sphi %s2224_s28, %s2724_s28   ;;  %s2109_s27 = sphi %s2222_s27, %s2723_s27   ;;  %s2105_s26 = sphi %s2220_s26, %s2722_s26   ;;  %s2101_s25 = sphi %s2218_s25, %s2721_s25   ;;  %s2097_s24 = sphi %s2216_s24, %s2720_s24   ;;  %s2093_s23 = sphi %s2214_s23, %s2719_s23   ;;  %s2089_s22 = sphi %s2212_s22, %s2728_s22   ;;  %s2085_s21 = sphi %s2210_s21, %s2727_s21  }
  0x1b   : > { %2676 = sst [smem:[#allocation17_spill]] %s2093_s23  ;;  %s1580_s15 = sadd.s32 4294967294, %s2125_s13  }
  0x1c   : > { %2677 = sst [smem:[#allocation18_spill]] %s2101_s25  ;;  %s43_s16 = sadd.s32 1, %s2117_s29 }
  0x1d   : > { %2678 = sst [smem:[#allocation19_spill]] %s2105_s26  ;;  %s46_s17 = sadd.s32 1, %s2121_s30 }
  0x1e   : > { %2679 = sst [smem:[#allocation20_spill]] %s2117_s29  ;;  %p44_p0 = scmp.ge.s32.totalorder %s43_s16, 2 }
  0x1f   : > { %2680 = sst [smem:[#allocation21_spill]] %s2121_s30  ;;  %s79_s18 = sadd.s32 1, %s2105_s26 }
  0x20   : > { %2681 = sst [smem:[#allocation22_spill]] %s2125_s13  ;;  %p86_p1 = scmp.ne.s32.totalorder %s2105_s26, %s2101_s25 }
  0x21   : > { %p87_p2 = scmp.eq.s32.totalorder %s2125_s13, 0  ;;  %s2730_s16 = smov (%p44_p0, %s43_s16), 0 }
  0x22   : > { %2682 = sst [smem:[#allocation23_spill]] %s2730_s16  ;;  %s2732_s17 = smov (!%p44_p0, %s46_s17), %s2121_s30 }
  0x23   : > { %s76_s19 = ssub.s32 %s2117_s29, %s2730_s16  ;;  %p2278_p3 = por %p87_p2, %p86_p1 }
  0x24   : > { %p48_p4 = scmp.ge.s32.totalorder %s2732_s17, 2  ;;  %p77_p5 = scmp.eq.s32.totalorder %s76_s19, 0 }
  0x25   : > { %p92_p6 = scmp.ne.s32.totalorder %s2101_s25, %s2097_s24  ;;  %p93_p7 = scmp.eq.s32.totalorder %s2264_s14, 0 }
  0x26   : > { %s2734_s17 = smov (%p48_p4, %s2732_s17), 0  ;;  %s365_s10 = sadd.s32 1, %s2093_s23 }
  0x27   : > { %2684 = sst [smem:[#allocation24_spill]] %s2734_s17  ;;  %p2289_p8 = por %p93_p7, %p92_p6 }
  0x28   : > { %s2287_s12 = scalar_select %p77_p5, %s2105_s26, %s79_s18  }
  0x29   : > { %s362_s11 = ssub.s32 %s2121_s30, %s2734_s17  ;;  %p375_p10 = scmp.ne.s32.totalorder %s2093_s23, %s2089_s22 }
  0x2a   : > { %2685 = sst [smem:[#allocation25_spill]] %s2287_s12  ;;  %p363_p9 = scmp.eq.s32.totalorder %s362_s11, 0 }
  0x2b   : > { %p376_p11 = scmp.eq.s32.totalorder %s2264_s14, 3  ;;  %p381_p13 = scmp.ne.s32.totalorder %s2089_s22, %s2085_s21 }
  0x2c   : > { %s2300_s24 = scalar_select %p363_p9, %s2093_s23, %s365_s10  }
  0x2d   : > { %p2302_p12 = por %p376_p11, %p375_p10  ;;  %p382_p0 = scmp.eq.s32.totalorder %s1580_s15, 3 }
  0x2e   : > { %2687 = sst [smem:[#allocation26_spill]] %s2300_s24  ;;  %p1699_p1 = scmp.lt.s32.totalorder %s2125_s13, 4 }
  0x2f   : > { %s2688_s19 = scalar_select %p2302_p12, 1, 0 }
  0x30   : > { %s2310_s18 = sand.u32 1, %s2105_s26   ;;  %p2312_p2 = por %p382_p0, %p381_p13 }
  0x31   : > { %2689 = sst [smem:[#allocation27_spill]] %s2688_s19  ;;  %s427_s17 = sand.u32 1, %s2125_s13  }
  0x32   : > { %s2690_s11 = scalar_select %p2312_p2, 1, 0 }
  0x33   : > { %p2319_p4 = pnand %p1699_p1, %p2278_p3  ;;  %s2693_s2 = sld [smem:[#allocation31_spill]] }
  0x34   : > { %2691 = sst [smem:[#allocation28_spill]] %s2690_s11  ;;  %s430_s26 = scalar_lea.vmem [#allocation6], %s2310_s18 }
  0x35   : > { %s437_s23 = sshll.u32 %s430_s26, 4  ;;  %p1586_p5 = scmp.ge.s32.totalorder %s2125_s13, 1  ;;  %s438_s23 = int_to_ptr.vmem [resolvable:$true] %s437_s23 }
  0x36   : > { %s428_s20 = scalar_lea.sflag [#allocation7], %s427_s17  ;;  %p529_p3 = scmp.lt.s32.totalorder %s2125_s13, 5 }
  0x37   : > { %s2695_s1 = sld [smem:[#allocation30_spill]]  ;;  %s411_s17 = scalar_lea.sflag [#allocation4], %s2310_s18 }
  0x38   : > { %p2332_p6 = pnand %p1586_p5, %p529_p3  ;;  %s2696_s7 = sld [smem:[#allocation35_spill]] }
  0x39   : > { %s433_s15 = scalar_lea.hbm %s2693_s2, %s2117_s29  ;;  %s413_s2 = scalar_lea.vmem [#allocation3], %s2310_s18 }
  0x3a   : > { %s435_s24 = sshll.u32 %s433_s15, 4  ;;  %s420_s26 = sshll.u32 %s413_s2, 4  ;;  %s436_s24 = int_to_ptr.hbm [resolvable:$true] %s435_s24  ;;  %s421_s26 = int_to_ptr.vmem [resolvable:$true] %s420_s26 }
  0x3b   : > { %1688 = dma.hbm_to_vmem [thread:$0]  (!%p2319_p4), %s436_s24, 16, %s438_s23, %s428_s20  }
  0x3c   : > { %s475_s19 = scalar_lea.vmem [#allocation8], %s2310_s18  ;;  %s1583_s2 = sshll.u32 %s2310_s18, 4 }
  0x3d   : > { %s416_s15 = scalar_lea.hbm %s2695_s1, %s2117_s29  ;;  %s482_s9 = sshll.u32 %s475_s19, 4  ;;  %s483_s9 = int_to_ptr.vmem [resolvable:$true] %s482_s9 }
  0x3e   : > { %s418_s21 = sshll.u32 %s416_s15, 4  ;;  %s478_s13 = scalar_lea.hbm %s2696_s7, %s2117_s29  ;;  %s419_s21 = int_to_ptr.hbm [resolvable:$true] %s418_s21 }
  0x3f   : > { %1685 = dma.hbm_to_vmem [thread:$0]  (!%p2319_p4), %s419_s21, 16, %s421_s26, %s411_s17  }
  0x40   : > { %s480_s12 = sshll.u32 %s478_s13, 4  ;;  %s1656_s30 = sshll.u32 %s2117_s29, 4  ;;  %s481_s12 = int_to_ptr.hbm [resolvable:$true] %s480_s12 }
  0x41   : > { %1691 = dma.hbm_to_vmem [thread:$0]  (!%p2319_p4), %s481_s12, 16, %s483_s9, %s428_s20  }
  0x42   : > { %s2697_s8 = sld [smem:[#allocation36_spill]]  ;;  %s493_s26 = scalar_lea.vmem [#allocation9], %s1583_s2 }
  0x43   : > { %s501_s17 = sshll.u32 %s493_s26, 4  ;;  %s490_s23 = scalar_lea.sflag [#allocation10], %s2310_s18  ;;  %s502_s17 = int_to_ptr.vmem [resolvable:$true] %s501_s17 }
  0x44   : > { %s2127_s24 = smov 64   ;;  %s2128_s19 = smov 4  }
  0x45   : > { %s2362_s9 = sand.u32 (!%p2332_p6), 1, %s2101_s25  }
  0x46   : > { %533 = sbr.rel (%p2332_p6) target bundleno = 2067 (0x813), region = 68  ;;  %s536_s1 = scalar_lea.sflag (!%p2332_p6), [#allocation4], %s2362_s9 }
  0x48   : > { %s498_s6 = scalar_lea.hbm %s2697_s8, %s1656_s30 }
  0x49   : > { %s499_s21 = sshll.u32 %s498_s6, 4  ;;  %s500_s21 = int_to_ptr.hbm [resolvable:$true] %s499_s21 }
  0x4a   : > { %1694 = dma.hbm_to_vmem [thread:$0]  (!%p2319_p4), %s500_s21, 256, %s502_s17, %s490_s23, %s2127_s24, %s2127_s24, %s2128_s19  }
  0x4b   : > { %2068 = dma.done.wait (%p2289_p8), %s536_s1, 16  }
  0x4c   : > { %2070 = vsyncadd (%p2289_p8), %s536_s1, 4294967280  ;;  %s544_s13 = sand.u32 1, %s2264_s14  }
  0x4d   : > { %s545_s18 = scalar_lea.sflag [#allocation7], %s544_s13 }
  0x4e   : > { %2072 = dma.done.wait (%p2289_p8), %s545_s18, 32  }
  0x4f   : > { %2074 = vsyncadd (%p2289_p8), %s545_s18, 4294967264  ;;  %s1587_s10 = sshll.u32 %s2362_s9, 4  ;;  %s563_s12 = scalar_lea.sflag [#allocation10], %s2362_s9 }
  0x50   : > { %s2379_s2 = scalar_lea.vmem [#allocation9], %s1587_s10 }
  0x51   : > { %2076 = dma.done.wait (%p2289_p8), %s563_s12, 256  }
  0x52   : > { %2078 = vsyncadd (%p2289_p8), %s563_s12, 4294967040  ;;  %s2660_s14 = sand.u32 1, %s2089_s22   ;;  %p652_p7 = scmp.lt.s32.totalorder %s2113_s28, 1 }
  0x53   : > { %s1588_s30 = sshll.u32 %s2660_s14, 4  ;;  %p657_p9 = scmp.lt.s32.totalorder %s2109_s27, 1 }
  0x54   : > { %s653_s15 = scalar_select %p652_p7, %s2113_s28, 1 }
  0x55   : > { %s2392_s21 = scalar_select %p657_p9, %s2109_s27, 1 }
  0x56   : > { %s1657_s16 = sshll.u32 %s653_s15, 4  ;;  %s2698_s0 = sld [smem:[#allocation29_spill]] }
  0x57   : > { %s1658_s24 = sshll.u32 %s2392_s21, 4  ;;  %s2699_s3 = sld [smem:[#allocation32_spill]] }
  0x58   : > { %s2700_s4 = sld [smem:[#allocation33_spill]]  ;;  %s669_s11 = scalar_lea.vmem %s2640_s5, %s2392_s21 }
  0x59   : > { %s2701_s7 = sld [smem:[#allocation34_spill]]  ;;  %s1660_s19 = sshll.u32 %s2392_s21, 5 }
  0x5a   : > { %s2703_s29 = sld [smem:[#allocation38_spill]]  ;;  %s2430_s20 = scalar_lea.vmem [#allocation11], %s1588_s30 }
  0x5b   : > { %s2704_s10 = sld [smem:[#allocation39_spill]]  ;;  %p1597_p8 = scmp.ne.s32.totalorder %s2109_s27, 0 }
  0x5c   : > { %s656_s23 = scalar_lea.vmem %s2698_s0, %s1657_s16  ;;  %s2702_s0 = sld [smem:[#allocation37_spill]] }
  0x5d   : > { %s2401_s13 = scalar_lea.vmem %s2699_s3, %s1658_s24 }
  0x5e   : > { %s2406_s12 = scalar_lea.vmem %s2700_s4, %s1658_s24  ;;  %688 = sbr.rel (%p1597_p8) target bundleno = 102 (0x66), region = 88 }
  0x5f   : > { %s672_s26 = scalar_lea.vmem %s2701_s7, %s2392_s21 }
  0x60   : > { %s2424_s25 = scalar_lea.vmem %s2703_s29, %s1660_s19 }
  0x61   : > { %s683_s4 = scalar_lea.vmem %s2704_s10, %s2392_s21 }
  0x62   : > { %s675_s8 = scalar_lea.vmem %s2702_s0, %s2392_s21 }
  0x63   : > { %v689_v0 = vld [vmem:[%s656_s23] sm:$0xff]  ;;  %vm691_vm0 = vcmask 261120   ;;  %v690_v1 = vld [vmem:[%s656_s23 + $0x8] sm:$0xff] }
  0x64   : > { %692 = vst.msk [vmem:[#allocation2] sm:$0xff] %vm691_vm0, %v689_v0 }
  0x65   : > { %693 = vst.msk [vmem:[#allocation2 + $0x8] sm:$0xff] %vm691_vm0, %v690_v1 }
  0x66 PF: > { %vm698_vm1 = vcmask 261120   ;;  %v2129_v6 = vmov 32.0   ;;  %v1662_v23 = vld [vmem:[%s2401_s13 + $0x8] sm:$0xff]  ;;  %v1661_v25 = vld [vmem:[%s2401_s13] sm:$0xff]  ;;  %s2705_s0 = scalar_lea.vmem [#allocation3], %s2362_s9  ;;  %s2706_s3 = scalar_lea.vmem [#allocation6], %s2362_s9 }
  0x67   : > { %1829 = vrcp.f32 %v2129_v6  ;;  %786 = vmatpush.bf16.msra.mxu0 %v1662_v23  ;;  %v1822_v44 = vld [vmem:[%s2705_s0] ss:$0 sm:$0xff]  ;;  %s2130_s7 = smov 72   ;;  %s2131_s29 = smov 120   ;;  %vm803_vm9 = vcmask 64512   ;;  %vm824_vm10 = vcmask 130048  }
  0x68   : > { %v1823_v49 = vld [vmem:[%s2706_s3] ss:$0 sm:$0xff]  ;;  %s2132_s6 = smov 96   ;;  %s2133_s14 = smov 88   ;;  %vm1121_vm11 = vcmask 195584  }
  0x69   : > { %s2134_s30 = smov 104   ;;  %s2135_s23 = smov 80  }
  0x6a   : > { %s2136_s13 = smov 112   ;;  %s2137_s15 = smov 64  }
  0x6b   : > { %v2433_v2 = vld [vmem:[#allocation2] sm:$0xff]  ;;  %787 = vmatpush.bf16.msra.mxu0 %v1661_v25  ;;  %s2138_s16 = smov 56   ;;  %s2139_s17 = smov 40  }
  0x6c   : > { %v699_v3 = vsel %vm698_vm1, %v2433_v2, 0.0  ;;  %v2437_v4 = vld [vmem:[#allocation2 + $0x8] sm:$0xff]  ;;  %s2140_s19 = smov 48   ;;  %s2141_s1 = smov 8  }
  0x6d   : > { %700 = vadd.xlane.f32.xlu0 %v699_v3  ;;  %v702_v5 = vsel %vm698_vm1, %v2437_v4, 0.0  ;;  %v1830_v7 = vpop.eup %1829  ;;  %s2142_s24 = smov 24   ;;  %s2143_s18 = smov 16  }
  0x6e   : > { %v706_v8 = vmul.f32 32.0, %v1830_v7  ;;  %vm710_vm2 = vweird.f32 %v1830_v7  ;;  %s2708_s3 = scalar_lea.vmem [#allocation8], %s2362_s9  ;;  %p1650_p10 = scmp.ne.s32.totalorder %s2109_s27, 1 }
  0x70   : > { %v707_v9 = vsub.f32 1.0, %v706_v8 }
  0x72   : > { %v708_v10 = vmul.f32 %v1830_v7, %v707_v9 }
  0x74   : > { %v709_v11 = vadd.f32 %v1830_v7, %v708_v10 }
  0x75   : > { %703 = vadd.xlane.f32.xlu0 %v702_v5 }
  0x76   : > { %v2441_v12 = vsel %vm710_vm2, %v1830_v7, %v709_v11 }
  0xe0   : > { %v701_v13 = vpop.xlane.xlu0 %700 }
  0xe1   : > { %v712_v14 = vmul.f32 %v2441_v12, %v701_v13 }
  0xe3   : > { %v714_v15 = vsub.f32 %v2433_v2, %v712_v14 }
  0xe5   : > { %v716_v16 = vmul.f32 %v714_v15, %v714_v15 }
  0xe7   : > { %v718_v17 = vsel %vm698_vm1, %v716_v16, 0.0 }
  0xe8   : > { %719 = vadd.xlane.f32.xlu1 %v718_v17  ;;  %v704_v18 = vpop.xlane.xlu0 %703 }
  0xe9   : > { %v713_v19 = vmul.f32 %v2441_v12, %v704_v18 }
  0xeb   : > { %v715_v20 = vsub.f32 %v2437_v4, %v713_v19 }
  0xed   : > { %v717_v21 = vmul.f32 %v715_v20, %v715_v20 }
  0xef   : > { %v721_v22 = vsel %vm698_vm1, %v717_v21, 0.0 }
  0xf0   : > { %722 = vadd.xlane.f32.xlu1 %v721_v22 }
 0x15b   : > { %v720_v24 = vpop.xlane.xlu1 %719 }
 0x15c   : > { %v724_v26 = vmul.f32 %v720_v24, %v2441_v12 }
 0x15e   : > { %v726_v27 = vadd.f32 1e-05, %v724_v26 }
 0x160   : > { %1831 = vrsqrt.f32 %v726_v27  ;;  %vm734_vm4 = vweird.f32 %v726_v27 }
 0x163   : > { %v723_v28 = vpop.xlane.xlu1 %722 }
 0x164   : > { %v725_v29 = vmul.f32 %v723_v28, %v2441_v12 }
 0x166   : > { %v1832_v30 = vpop.eup %1831  ;;  %v727_v31 = vadd.f32 1e-05, %v725_v29 }
 0x167   : > { %v729_v32 = vmul.f32 %v1832_v30, %v726_v27  ;;  %vm735_vm3 = vweird.f32 %v1832_v30 }
 0x168   : > { %1833 = vrsqrt.f32 %v727_v31  ;;  %vm736_vm5 = vmor %vm734_vm4, %vm735_vm3  ;;  %vm744_vm7 = vweird.f32 %v727_v31  ;;  %vm1313_vm3 = vcmask 523264  }
 0x169   : > { %v730_v33 = vmul.f32 %v1832_v30, %v729_v32 }
 0x16b   : > { %v731_v34 = vmul.f32 0.5, %v730_v33 }
 0x16d   : > { %v732_v35 = vsub.f32 1.5, %v731_v34 }
 0x16e   : > { %v1834_v36 = vpop.eup %1833 }
 0x16f   : > { %v733_v37 = vmul.f32 %v1832_v30, %v732_v35  ;;  %v739_v38 = vmul.f32 %v1834_v36, %v727_v31  ;;  %vm745_vm6 = vweird.f32 %v1834_v36 }
 0x170   : > { %vm746_vm8 = vmor %vm744_vm7, %vm745_vm6 }
 0x171   : > { %v740_v39 = vmul.f32 %v1834_v36, %v739_v38  ;;  %v737_v40 = vsel %vm736_vm5, %v1832_v30, %v733_v37 }
 0x172   : > { %v748_v43 = vmul.f32 %v737_v40, %v714_v15 }
 0x173   : > { %v741_v41 = vmul.f32 0.5, %v740_v39 }
 0x174   : > { %v753_v48 = vmul.f32 %v1822_v44, %v748_v43 }
 0x175   : > { %v742_v42 = vsub.f32 1.5, %v741_v41 }
 0x176   : > { %v758_v51 = vadd.f32 %v1823_v49, %v753_v48 }
 0x177   : > { %v743_v45 = vmul.f32 %v1834_v36, %v742_v42 }
 0x179   : > { %v747_v46 = vsel %vm746_vm8, %v1834_v36, %v743_v45 }
 0x17a   : > { %v749_v47 = vmul.f32 %v747_v46, %v715_v20 }
 0x17c   : > { %v754_v50 = vmul.f32 %v1822_v44, %v749_v47 }
 0x17e   : > { %v759_v52 = vadd.f32 %v1823_v49, %v754_v50 }
 0x180   : > { %v760_v53 = vpack.c.bf16 %v759_v52, %v758_v51 }
 0x182   : > { %1606 = vmatmul.msk.bf16.vlgmr.msra.gmra.mxu0 %vm698_vm1, %v760_v53 }
 0x1ff   : > { %v789_v54 = vpop.f32.mrf.mxu0 }
 0x200   : > { %v794_v55 = vpack.c.bf16 %v789_v54, %v789_v54 }
 0x202   : > { %v798_v58 = vunpack.c.l.b16 %v794_v55 }
 0x207   : > { %v791_v56 = vpop.f32.mrf.mxu0 }
 0x208   : > { %v795_v57 = vpack.c.bf16 %v791_v56, %v791_v56 }
 0x20a   : > { %v799_v59 = vunpack.c.l.b16 %v795_v57 }
 0x20c   : > { %v2458_v60 = vpack.c.b16 %v799_v59, %v798_v58 }
 0x20e   : > { %1022 = vrot.lane.b32.xlu1 %v2458_v60, %s2130_s7  ;;  %874 = vrot.lane.b32.xlu0 %v2458_v60, %s2131_s29 }
 0x20f   : > { %801 = vrot.lane.b32.xlu2 %v2458_v60, %s2132_s6 }
 0x217   : > { %876 = vrot.lane.b32.xlu2 %v2458_v60, %s2133_s14 }
 0x21f   : > { %1020 = vrot.lane.b32.xlu2 %v2458_v60, %s2134_s30 }
 0x227   : > { %949 = vrot.lane.b32.xlu2 %v2458_v60, %s2135_s23 }
 0x22f   : > { %947 = vrot.lane.b32.xlu2 %v2458_v60, %s2136_s13 }
 0x269   : > { %v802_v61 = vpop.permute.xlu2 %801 }
 0x26a   : > { %v808_v62 = vsel %vm803_vm9, %v802_v61, 0 }
 0x26b   : > { %817 = vmatpush.bf16.xpose.msra.mxu1 %v808_v62 }
 0x271   : > { %v877_v63 = vpop.permute.xlu2 %876 }
 0x272   : > { %1607 = vmatmul.msk.bf16.vlgmr.msra.gmra.mxu1 %vm803_vm9, %v2458_v60  ;;  %v882_v0 = vsel %vm803_vm9, %v877_v63, 0 }
 0x273   : > { %891 = vmatpush.bf16.xpose.msra.mxu3 %v882_v0 }
 0x279   : > { %v1021_v1 = vpop.permute.xlu2 %1020 }
 0x280   : > { %v1023_v3 = vpop.permute.xlu1 %1022  ;;  %v875_v5 = vpop.permute.xlu0 %874 }
 0x281   : > { %v950_v6 = vpop.permute.xlu2 %949  ;;  %1609 = vmatmul.msk.bf16.vlgmr.msra.gmra.mxu3 %vm803_vm9, %v875_v5  ;;  %v1028_v7 = vsel %vm803_vm9, %v1023_v3, 0 }
 0x282   : > { %v955_v8 = vsel %vm803_vm9, %v950_v6, 0  ;;  %1037 = vmatpush.bf16.xpose.msrb.mxu3 %v1028_v7 }
 0x283   : > { %964 = vmatpush.bf16.xpose.msrb.mxu0 %v955_v8 }
 0x289   : > { %v948_v9 = vpop.permute.xlu2 %947 }
 0x28a   : > { %1611 = vmatmul.msk.bf16.vlgmr.msrb.gmra.mxu0 %vm803_vm9, %v948_v9 }
 0x291   : > { %1613 = vmatmul.msk.bf16.vlgmr.msrb.gmra.mxu3 %vm803_vm9, %v1021_v1 }
 0x2ef   : > { %v819_v10 = vpop.f32.mrf.mxu1 }
 0x2f0   : > { %v825_v11 = vsel %vm824_vm10, %v819_v10, -inf }
 0x2f1   : > { %826 = vmax.xlane.f32.xlu0 %v825_v11 }
 0x2f7   : > { %v821_v13 = vpop.f32.mrf.mxu1 }
 0x2f8   : > { %v828_v14 = vsel %vm824_vm10, %v821_v13, -inf }
 0x2f9   : > { %829 = vmax.xlane.f32.xlu2 %v828_v14 }
 0x304   : > { %v893_v15 = vpop.f32.mrf.mxu3 }
 0x305   : > { %v898_v16 = vsel %vm824_vm10, %v893_v15, -inf }
 0x306   : > { %899 = vmax.xlane.f32.xlu1 %v898_v16 }
 0x307   : > { %v966_v17 = vpop.f32.mrf.mxu0 }
 0x308   : > { %v971_v23 = vsel %vm824_vm10, %v966_v17, -inf }
 0x30c   : > { %v895_v18 = vpop.f32.mrf.mxu3 }
 0x30d   : > { %v901_v19 = vsel %vm824_vm10, %v895_v18, -inf }
 0x30e   : > { %902 = vmax.xlane.f32.xlu0 %v901_v19 }
 0x30f   : > { %v968_v20 = vpop.f32.mrf.mxu0 }
 0x310   : > { %v974_v21 = vsel %vm824_vm10, %v968_v20, -inf }
 0x311   : > { %975 = vmax.xlane.f32.xlu2 %v974_v21 }
 0x314   : > { %v1039_v22 = vpop.f32.mrf.mxu3 }
 0x315   : > { %v1044_v24 = vsel %vm824_vm10, %v1039_v22, -inf }
 0x316   : > { %972 = vmax.xlane.f32.xlu0 %v971_v23 }
 0x319   : > { %1045 = vmax.xlane.f32.xlu2 %v1044_v24 }
 0x31c   : > { %v1041_v25 = vpop.f32.mrf.mxu3 }
 0x31d   : > { %v1047_v26 = vsel %vm824_vm10, %v1041_v25, -inf }
 0x31e   : > { %1048 = vmax.xlane.f32.xlu1 %v1047_v26 }
 0x331   : > { %854 = vrot.lane.b32.xlu2 %v2458_v60, %s2137_s15 }
 0x337   : > { %927 = vrot.lane.b32.xlu1 %v2458_v60, %s2138_s16 }
 0x364   : > { %v827_v27 = vpop.xlane.xlu0 %826 }
 0x365   : > { %v831_v28 = vsub.f32 %v819_v10, %v827_v27 }
 0x367   : > { %v833_v29 = vmul.f32 1.442695, %v831_v28 }
 0x369   : > { %1835 = vpow2.f32 %v833_v29 }
 0x36c   : > { %v830_v30 = vpop.xlane.xlu2 %829 }
 0x36d   : > { %v832_v31 = vsub.f32 %v821_v13, %v830_v30 }
 0x36f   : > { %v2486_v32 = vpop.eup %1835  ;;  %v835_v33 = vmul.f32 1.442695, %v832_v31 }
 0x370   : > { %v837_v34 = vsel %vm824_vm10, %v2486_v32, 0.0 }
 0x371   : > { %1837 = vpow2.f32 %v835_v33  ;;  %838 = vadd.xlane.f32.xlu1 %v837_v34 }
 0x377   : > { %v1838_v35 = vpop.eup %1837 }
 0x378   : > { %v840_v36 = vsel %vm824_vm10, %v1838_v35, 0.0 }
 0x379   : > { %841 = vadd.xlane.f32.xlu0 %v840_v36  ;;  %v900_v37 = vpop.xlane.xlu1 %899 }
 0x37a   : > { %v904_v38 = vsub.f32 %v893_v15, %v900_v37 }
 0x37c   : > { %v906_v39 = vmul.f32 1.442695, %v904_v38 }
 0x37e   : > { %1839 = vpow2.f32 %v906_v39 }
 0x381   : > { %v903_v40 = vpop.xlane.xlu0 %902 }
 0x382   : > { %v905_v45 = vsub.f32 %v895_v18, %v903_v40 }
 0x384   : > { %v2491_v41 = vpop.eup %1839  ;;  %v976_v42 = vpop.xlane.xlu2 %975  ;;  %v908_v49 = vmul.f32 1.442695, %v905_v45 }
 0x385   : > { %v978_v43 = vsub.f32 %v968_v20, %v976_v42  ;;  %v910_v44 = vsel %vm824_vm10, %v2491_v41, 0.0 }
 0x386   : > { %911 = vadd.xlane.f32.xlu1 %v910_v44 }
 0x387   : > { %v981_v46 = vmul.f32 1.442695, %v978_v43 }
 0x389   : > { %1841 = vpow2.f32 %v981_v46  ;;  %v973_v47 = vpop.xlane.xlu0 %972 }
 0x38a   : > { %v977_v48 = vsub.f32 %v966_v17, %v973_v47 }
 0x38c   : > { %v979_v50 = vmul.f32 1.442695, %v977_v48  ;;  %v1046_v51 = vpop.xlane.xlu2 %1045 }
 0x38d   : > { %v1050_v53 = vsub.f32 %v1039_v22, %v1046_v51 }
 0x38e   : > { %1843 = vpow2.f32 %v979_v50 }
 0x38f   : > { %v2495_v52 = vpop.eup %1841  ;;  %1845 = vpow2.f32 %v908_v49  ;;  %v1052_v55 = vmul.f32 1.442695, %v1050_v53 }
 0x390   : > { %v986_v54 = vsel %vm824_vm10, %v2495_v52, 0.0 }
 0x391   : > { %987 = vadd.xlane.f32.xlu0 %v986_v54  ;;  %v1049_v57 = vpop.xlane.xlu1 %1048  ;;  %1847 = vpow2.f32 %v1052_v55 }
 0x392   : > { %v1051_v62 = vsub.f32 %v1041_v25, %v1049_v57 }
 0x394   : > { %v2499_v56 = vpop.eup %1843  ;;  %v855_v58 = vpop.permute.xlu2 %854  ;;  %v1054_v0 = vmul.f32 1.442695, %v1051_v62 }
 0x395   : > { %v1846_v59 = vpop.eup %1845  ;;  %867 = vmatpush.bf16.msra.mxu2 %v855_v58  ;;  %v983_v61 = vsel %vm824_vm10, %v2499_v56, 0.0 }
 0x396   : > { %984 = vadd.xlane.f32.xlu2 %v983_v61  ;;  %v913_v63 = vsel %vm824_vm10, %v1846_v59, 0.0  ;;  %1849 = vpow2.f32 %v1054_v0 }
 0x397   : > { %v1848_v1 = vpop.eup %1847 }
 0x398   : > { %v1056_v3 = vsel %vm824_vm10, %v1848_v1, 0.0 }
 0x399   : > { %914 = vadd.xlane.f32.xlu0 %v913_v63 }
 0x39c   : > { %v1850_v5 = vpop.eup %1849 }
 0x39d   : > { %v1059_v6 = vsel %vm824_vm10, %v1850_v5, 0.0 }
 0x39f   : > { %1073 = vrot.lane.b32.xlu1 %v2458_v60, %s2139_s17 }
 0x3a1   : > { %1057 = vadd.xlane.f32.xlu0 %v1056_v3  ;;  %v1664_v3 = vld [vmem:[%s2406_s12 + $0x8] sm:$0xff] }
 0x3a2   : > { %1154 = vmatpush.bf16.msra.mxu0 %v1664_v3 }
 0x3a9   : > { %1060 = vadd.xlane.f32.xlu0 %v1059_v6  ;;  %v928_v7 = vpop.permute.xlu1 %927 }
 0x3aa   : > { %940 = vmatpush.bf16.msrb.mxu2 %v928_v7 }
 0x3bd   : > { %1000 = vrot.lane.b32.xlu0 %v2458_v60, %s2140_s19 }
 0x3e4   : > { %v839_v8 = vpop.xlane.xlu1 %838 }
 0x3e5   : > { %1851 = vrcp.f32 %v839_v8 }
 0x3eb   : > { %v1852_v10 = vpop.eup %1851 }
 0x3ec   : > { %v842_v9 = vpop.xlane.xlu0 %841  ;;  %v845_v11 = vmul.f32 %v1852_v10, %v2486_v32 }
 0x3ed   : > { %1853 = vrcp.f32 %v842_v9 }
 0x3ee   : > { %v847_v15 = vpack.c.bf16 %v845_v11, %v845_v11 }
 0x3f0   : > { %v851_v17 = vunpack.c.l.b16 %v847_v15 }
 0x3f3   : > { %v1854_v13 = vpop.eup %1853 }
 0x3f4   : > { %v846_v14 = vmul.f32 %v1854_v13, %v1838_v35 }
 0x3f6   : > { %v848_v16 = vpack.c.bf16 %v846_v14, %v846_v14 }
 0x3f8   : > { %v852_v18 = vunpack.c.l.b16 %v848_v16 }
 0x3f9   : > { %v912_v20 = vpop.xlane.xlu1 %911 }
 0x3fa   : > { %v853_v19 = vpack.c.b16 %v852_v18, %v851_v17  ;;  %1855 = vrcp.f32 %v912_v20 }
 0x3fc   : > { %1608 = vmatmul.msk.bf16.vlgmr.msra.gmra.mxu2 %vm824_vm10, %v853_v19 }
 0x400   : > { %v1856_v22 = vpop.eup %1855 }
 0x401   : > { %v918_v23 = vmul.f32 %v1856_v22, %v2491_v41  ;;  %v1824_v22 = vld [vmem:[%s669_s11] ss:$0 sm:$0xff] }
 0x403   : > { %v920_v26 = vpack.c.bf16 %v918_v23, %v918_v23 }
 0x404   : > { %v988_v21 = vpop.xlane.xlu0 %987 }
 0x405   : > { %v924_v30 = vunpack.c.l.b16 %v920_v26 }
 0x409   : > { %v985_v32 = vpop.xlane.xlu2 %984 }
 0x40c   : > { %v915_v60 = vpop.xlane.xlu0 %914 }
 0x40d   : > { %1857 = vrcp.f32 %v915_v60 }
 0x411   : > { %v1074_v24 = vpop.permute.xlu1 %1073 }
 0x412   : > { %1086 = vmatpush.bf16.msra.mxu2 %v1074_v24 }
 0x413   : > { %v1858_v25 = vpop.eup %1857 }
 0x414   : > { %v919_v27 = vmul.f32 %v1858_v25, %v1846_v59  ;;  %v1058_v28 = vpop.xlane.xlu0 %1057 }
 0x415   : > { %1859 = vrcp.f32 %v1058_v28 }
 0x416   : > { %v921_v29 = vpack.c.bf16 %v919_v27, %v919_v27  ;;  %1861 = vrcp.f32 %v985_v32 }
 0x418   : > { %v925_v31 = vunpack.c.l.b16 %v921_v29 }
 0x41a   : > { %v926_v33 = vpack.c.b16 %v925_v31, %v924_v30 }
 0x41b   : > { %v1860_v35 = vpop.eup %1859 }
 0x41c   : > { %v1061_v34 = vpop.xlane.xlu0 %1060  ;;  %1610 = vmatmul.msk.bf16.vlgmr.msrb.gmra.mxu2 %vm824_vm10, %v926_v33  ;;  %v1064_v36 = vmul.f32 %v1860_v35, %v1848_v1  ;;  %v1862_v37 = vpop.eup %1861 }
 0x41d   : > { %1863 = vrcp.f32 %v1061_v34  ;;  %v991_v42 = vmul.f32 %v1862_v37, %v2499_v56 }
 0x41e   : > { %1865 = vrcp.f32 %v988_v21  ;;  %v1066_v40 = vpack.c.bf16 %v1064_v36, %v1064_v36 }
 0x41f   : > { %v993_v47 = vpack.c.bf16 %v991_v42, %v991_v42  ;;  %v1665_v42 = vld [vmem:[%s2379_s2] sm:$0xff] }
 0x420   : > { %v1070_v45 = vunpack.c.l.b16 %v1066_v40 }
 0x421   : > { %v997_v50 = vunpack.c.l.b16 %v993_v47 }
 0x423   : > { %v1864_v38 = vpop.eup %1863 }
 0x424   : > { %v1866_v39 = vpop.eup %1865  ;;  %v1065_v41 = vmul.f32 %v1864_v38, %v1850_v5  ;;  %v1663_v5 = vld [vmem:[%s2406_s12] sm:$0xff] }
 0x425   : > { %v992_v44 = vmul.f32 %v1866_v39, %v2495_v52  ;;  %1155 = vmatpush.bf16.msra.mxu0 %v1663_v5  ;;  %v1666_v39 = vld [vmem:[%s2379_s2 + $0x8] sm:$0xff] }
 0x426   : > { %v1067_v43 = vpack.c.bf16 %v1065_v41, %v1065_v41 }
 0x427   : > { %v994_v49 = vpack.c.bf16 %v992_v44, %v992_v44 }
 0x428   : > { %v1071_v46 = vunpack.c.l.b16 %v1067_v43 }
 0x429   : > { %v998_v51 = vunpack.c.l.b16 %v994_v49 }
 0x42a   : > { %v1072_v48 = vpack.c.b16 %v1071_v46, %v1070_v45 }
 0x42b   : > { %v999_v54 = vpack.c.b16 %v998_v51, %v997_v50 }
 0x42c   : > { %1614 = vmatmul.msk.bf16.vlgmr.msra.gmra.mxu2 %vm824_vm10, %v1072_v48 }
 0x42f   : > { %v1001_v53 = vpop.permute.xlu0 %1000 }
 0x430   : > { %1013 = vmatpush.bf16.msrb.mxu1 %v1001_v53 }
 0x433   : > { %1612 = vmatmul.msk.bf16.vlgmr.msrb.gmra.mxu1 %vm824_vm10, %v999_v54 }
 0x434   : > { %1250 = vmatpush.bf16.msra.mxu1 %v1666_v39 }
 0x438   : > { %1251 = vmatpush.bf16.msra.mxu1 %v1665_v42 }
 0x47f   : > { %v869_v55 = vpop.f32.mrf.mxu2 }
 0x487   : > { %v871_v57 = vpop.f32.mrf.mxu2 }
 0x49f   : > { %v942_v56 = vpop.f32.mrf.mxu2 }
 0x4a7   : > { %v944_v58 = vpop.f32.mrf.mxu2 }
 0x4a8   : > { %v1807_v52 = vpack.i.bf16 %v944_v58, %v942_v56 }
 0x4aa   : > { %1808 = vrot.lane.b32.xlu1 %v1807_v52, %s2141_s1 }
 0x4af   : > { %v1088_v59 = vpop.f32.mrf.mxu2 }
 0x4b0   : > { %v1015_v61 = vpop.f32.mrf.mxu1 }
 0x4b7   : > { %v1090_v62 = vpop.f32.mrf.mxu2 }
 0x4b8   : > { %v1817_v63 = vpack.i.bf16 %v1090_v62, %v1088_v59  ;;  %v1017_v0 = vpop.f32.mrf.mxu1 }
 0x4b9   : > { %v1812_v1 = vpack.i.bf16 %v1017_v0, %v1015_v61 }
 0x4ba   : > { %1818 = vrot.lane.b32.xlu0 %v1817_v63, %s2142_s24  ;;  %v1826_v63 = vld [vmem:[%s2708_s3] ss:$0 sm:$0xff] }
 0x4bb   : > { %1813 = vrot.lane.b32.xlu1 %v1812_v1, %s2143_s18 }
 0x51c   : > { %v1809_v6 = vpop.permute.xlu1 %1808 }
 0x51d   : > { %v1811_v7 = vunpack.i.h.bf16 %v1809_v6  ;;  %v1810_v8 = vunpack.i.l.bf16 %v1809_v6 }
 0x51f   : > { %v1118_v14 = vsel %vm803_vm9, %v871_v57, %v1811_v7  ;;  %v1117_v15 = vsel %vm803_vm9, %v869_v55, %v1810_v8  ;;  %v1670_v8 = vld [vmem:[%s2424_s25 + $0x18] sm:$0xff] }
 0x520   : > { %1321 = vmatpush.bf16.msra.mxu3 %v1670_v8 }
 0x52c   : > { %v1819_v9 = vpop.permute.xlu0 %1818 }
 0x52d   : > { %v1814_v10 = vpop.permute.xlu1 %1813  ;;  %v1821_v16 = vunpack.i.h.bf16 %v1819_v9  ;;  %v1820_v17 = vunpack.i.l.bf16 %v1819_v9  ;;  %v1669_v9 = vld [vmem:[%s2424_s25 + $0x10] sm:$0xff] }
 0x52e   : > { %v1816_v11 = vunpack.i.h.bf16 %v1814_v10  ;;  %v1815_v13 = vunpack.i.l.bf16 %v1814_v10  ;;  %1322 = vmatpush.bf16.msra.mxu3 %v1669_v9  ;;  %v1668_v10 = vld [vmem:[%s2424_s25 + $0x8] sm:$0xff] }
 0x530   : > { %v1120_v18 = vsel %vm824_vm10, %v1118_v14, %v1816_v11  ;;  %v1119_v19 = vsel %vm824_vm10, %v1117_v15, %v1815_v13  ;;  %v1667_v11 = vld [vmem:[%s2424_s25] sm:$0xff] }
 0x531   : > { %v1123_v20 = vsel %vm1121_vm11, %v1120_v18, %v1821_v16  ;;  %v1122_v21 = vsel %vm1121_vm11, %v1119_v19, %v1820_v17  ;;  %v1827_v13 = vld [vmem:[%s675_s8] ss:$0 sm:$0xff] }
 0x532   : > { %v1124_v60 = vpack.c.bf16 %v1123_v20, %v1122_v21  ;;  %1323 = vmatpush.bf16.msra.mxu3 %v1668_v10 }
 0x534   : > { %1623 = vmatmul.msk.bf16.vlgmr.msra.gmra.mxu0 %vm698_vm1, %v1124_v60 }
 0x536   : > { %1324 = vmatpush.bf16.msra.mxu3 %v1667_v11 }
 0x5b1   : > { %v1157_v23 = vpop.f32.mrf.mxu0 }
 0x5b2   : > { %v1158_v24 = vadd.f32 %v1824_v22, %v1157_v23 }
 0x5b4   : > { %v2530_v25 = vadd.f32 %v1158_v24, %v2433_v2 }
 0x5b6   : > { %v1166_v26 = vsel %vm698_vm1, %v2530_v25, 0.0 }
 0x5b7   : > { %1167 = vadd.xlane.f32.xlu1 %v1166_v26 }
 0x5b9   : > { %v1159_v27 = vpop.f32.mrf.mxu0 }
 0x5ba   : > { %v1160_v28 = vadd.f32 %v1824_v22, %v1159_v27 }
 0x5bc   : > { %v2535_v29 = vadd.f32 %v1160_v28, %v2437_v4 }
 0x5be   : > { %v1169_v30 = vsel %vm698_vm1, %v2535_v29, 0.0 }
 0x5bf   : > { %1170 = vadd.xlane.f32.xlu0 %v1169_v30 }
 0x62a   : > { %v1168_v31 = vpop.xlane.xlu1 %1167 }
 0x62b   : > { %v1172_v32 = vmul.f32 %v1168_v31, %v2441_v12 }
 0x62d   : > { %v1174_v2 = vsub.f32 %v2530_v25, %v1172_v32 }
 0x62f   : > { %v1176_v33 = vmul.f32 %v1174_v2, %v1174_v2 }
 0x631   : > { %v1178_v34 = vsel %vm698_vm1, %v1176_v33, 0.0 }
 0x632   : > { %v1171_v35 = vpop.xlane.xlu0 %1170  ;;  %1179 = vadd.xlane.f32.xlu2 %v1178_v34 }
 0x633   : > { %v1173_v36 = vmul.f32 %v1171_v35, %v2441_v12 }
 0x635   : > { %v1175_v4 = vsub.f32 %v2535_v29, %v1173_v36 }
 0x637   : > { %v1177_v37 = vmul.f32 %v1175_v4, %v1175_v4 }
 0x639   : > { %v1181_v38 = vsel %vm698_vm1, %v1177_v37, 0.0 }
 0x63a   : > { %1182 = vadd.xlane.f32.xlu2 %v1181_v38 }
 0x6a5   : > { %v1180_v40 = vpop.xlane.xlu2 %1179 }
 0x6a6   : > { %v1184_v41 = vmul.f32 %v1180_v40, %v2441_v12 }
 0x6a8   : > { %v1186_v43 = vadd.f32 1e-05, %v1184_v41 }
 0x6aa   : > { %1867 = vrsqrt.f32 %v1186_v43  ;;  %vm1194_vm13 = vweird.f32 %v1186_v43 }
 0x6ad   : > { %v1183_v44 = vpop.xlane.xlu2 %1182 }
 0x6ae   : > { %v1185_v45 = vmul.f32 %v1183_v44, %v2441_v12  ;;  %v1825_v12 = vld [vmem:[%s672_s26] ss:$0 sm:$0xff] }
 0x6b0   : > { %v1868_v46 = vpop.eup %1867  ;;  %v1187_v47 = vadd.f32 1e-05, %v1185_v45 }
 0x6b1   : > { %v1189_v48 = vmul.f32 %v1868_v46, %v1186_v43  ;;  %vm1195_vm12 = vweird.f32 %v1868_v46 }
 0x6b2   : > { %1869 = vrsqrt.f32 %v1187_v47  ;;  %vm1196_vm14 = vmor %vm1194_vm13, %vm1195_vm12  ;;  %vm1204_vm0 = vweird.f32 %v1187_v47 }
 0x6b3   : > { %v1190_v49 = vmul.f32 %v1868_v46, %v1189_v48 }
 0x6b5   : > { %v1191_v50 = vmul.f32 0.5, %v1190_v49 }
 0x6b7   : > { %v1192_v51 = vsub.f32 1.5, %v1191_v50 }
 0x6b8   : > { %v1870_v53 = vpop.eup %1869 }
 0x6b9   : > { %v1193_v54 = vmul.f32 %v1868_v46, %v1192_v51  ;;  %v1199_v55 = vmul.f32 %v1870_v53, %v1187_v47  ;;  %vm1205_vm15 = vweird.f32 %v1870_v53 }
 0x6ba   : > { %vm1206_vm2 = vmor %vm1204_vm0, %vm1205_vm15 }
 0x6bb   : > { %v1200_v57 = vmul.f32 %v1870_v53, %v1199_v55  ;;  %v1197_v56 = vsel %vm1196_vm14, %v1868_v46, %v1193_v54 }
 0x6bc   : > { %v1208_v59 = vmul.f32 %v1197_v56, %v1174_v2 }
 0x6bd   : > { %v1201_v58 = vmul.f32 0.5, %v1200_v57 }
 0x6be   : > { %v1213_v0 = vmul.f32 %v1825_v12, %v1208_v59 }
 0x6bf   : > { %v1202_v52 = vsub.f32 1.5, %v1201_v58 }
 0x6c0   : > { %v1218_v5 = vadd.f32 %v1826_v63, %v1213_v0 }
 0x6c1   : > { %v1203_v61 = vmul.f32 %v1870_v53, %v1202_v52 }
 0x6c3   : > { %v1207_v62 = vsel %vm1206_vm2, %v1870_v53, %v1203_v61 }
 0x6c4   : > { %v1209_v1 = vmul.f32 %v1207_v62, %v1175_v4  ;;  %v1828_v4 = vld [vmem:[%s683_s4] ss:$0 sm:$0xff] }
 0x6c6   : > { %v1214_v3 = vmul.f32 %v1825_v12, %v1209_v1 }
 0x6c8   : > { %v1219_v6 = vadd.f32 %v1826_v63, %v1214_v3 }
 0x6ca   : > { %v1220_v7 = vpack.c.bf16 %v1219_v6, %v1218_v5 }
 0x6cc   : > { %1632 = vmatmul.msk.bf16.vlgmr.msra.gmra.mxu1 %vm698_vm1, %v1220_v7 }
 0x749   : > { %v1253_v14 = vpop.f32.mrf.mxu1 }
 0x74a   : > { %v1254_v15 = vadd.f32 %v1827_v13, %v1253_v14 }
 0x74c   : > { %v1260_v16 = vmul.f32 0.044715, %v1254_v15  ;;  %v1258_v32 = vmul.f32 0.5, %v1254_v15 }
 0x74e   : > { %v1262_v17 = vmul.f32 %v1260_v16, %v1254_v15 }
 0x750   : > { %v1264_v18 = vmul.f32 %v1262_v17, %v1254_v15 }
 0x751   : > { %v1255_v19 = vpop.f32.mrf.mxu1 }
 0x752   : > { %v1266_v20 = vadd.f32 %v1264_v18, %v1254_v15  ;;  %v1256_v21 = vadd.f32 %v1827_v13, %v1255_v19 }
 0x754   : > { %v1261_v60 = vmul.f32 0.044715, %v1256_v21  ;;  %v1268_v22 = vmul.f32 0.7978846, %v1266_v20  ;;  %v1259_v2 = vmul.f32 0.5, %v1256_v21 }
 0x756   : > { %v1263_v23 = vmul.f32 %v1261_v60, %v1256_v21  ;;  %1871 = vtanh.f32 %v1268_v22 }
 0x758   : > { %v1265_v24 = vmul.f32 %v1263_v23, %v1256_v21 }
 0x75a   : > { %v1267_v26 = vadd.f32 %v1265_v24, %v1256_v21 }
 0x75c   : > { %v1269_v27 = vmul.f32 0.7978846, %v1267_v26  ;;  %v1872_v28 = vpop.eup %1871 }
 0x75d   : > { %v1272_v30 = vadd.f32 1.0, %v1872_v28 }
 0x75e   : > { %1873 = vtanh.f32 %v1269_v27 }
 0x75f   : > { %v1274_v34 = vmul.f32 %v1272_v30, %v1258_v32 }
 0x764   : > { %v1874_v31 = vpop.eup %1873 }
 0x765   : > { %v1273_v33 = vadd.f32 1.0, %v1874_v31 }
 0x767   : > { %v1275_v35 = vmul.f32 %v1273_v33, %v1259_v2 }
 0x769   : > { %v1276_v36 = vpack.c.bf16 %v1275_v35, %v1274_v34 }
 0x76b   : > { %1649 = vmatmul.msk.bf16.vlgmr.msra.gmra.mxu3 %vm1313_vm3, %v1276_v36 }
 0x7ee   : > { %v1326_v37 = vpop.f32.mrf.mxu3 }
 0x7ef   : > { %v1327_v38 = vadd.f32 %v1828_v4, %v1326_v37 }
 0x7f1   : > { %v1331_v39 = vadd.f32 %v1327_v38, %v2530_v25 }
 0x7f3   : > { %1333 = vst.msk [vmem:[#allocation2] sm:$0xff] %vm698_vm1, %v1331_v39 }
 0x7f6   : > { %v1328_v40 = vpop.f32.mrf.mxu3 }
 0x7f7   : > { %v1329_v41 = vadd.f32 %v1828_v4, %v1328_v40  ;;  %1338 = sbr.rel (%p1650_p10) target bundleno = 2046 (0x7fe), region = 92 }
 0x7f9   : > { %v1332_v42 = vadd.f32 %v1329_v41, %v2535_v29 }
 0x7fb   : > { %1334 = vst.msk [vmem:[#allocation2 + $0x8] sm:$0xff] %vm698_vm1, %v1332_v42 }
 0x7fc   : > { %1339 = vst.msk [vmem:[%s2430_s20] sm:$0xff] %vm698_vm1, %v1331_v39 }
 0x7fd   : > { %1340 = vst.msk [vmem:[%s2430_s20 + $0x8] sm:$0xff] %vm698_vm1, %v1332_v42 }
 0x7fe PF: > { %s1671_s21 = sshll.u32 %s2113_s28, 4  ;;  %s2712_s30 = sld [smem:[#allocation40_spill]] }
 0x7ff   : > { %s1354_s13 = sshll.u32 %s2430_s20, 4  ;;  %s2714_s16 = sand.u32 1, %s2089_s22   ;;  %s1355_s13 = int_to_ptr.vmem [resolvable:$true] %s1354_s13 }
 0x800   : > { %s1342_s17 = scalar_lea.sflag [#allocation5], %s2714_s16 }
 0x804   : > { %s2713_s15 = smov %s2712_s30  ;;  %s1353_s23 = scalar_lea.hbm %s2712_s30, %s1671_s21 }
 0x805   : > { %s1356_s27 = sshll.u32 %s1353_s23, 4  ;;  %s2015_s28 = scalar_lea.hbm %s2713_s15, 32  ;;  %s1357_s27 = int_to_ptr.hbm [resolvable:$true] %s1356_s27 }
 0x806   : > { %s2009_s19 = sshra.s32 %s1357_s27, 4  ;;  %s2010_s19 = int_to_ptr.hbm [resolvable:$true] %s2009_s19 }
 0x807   : > { %s2011_s24 = scalar_lea.hbm %s2010_s19, 16  ;;  %p2016_p1 = scmp.lt.s32.totalorder %s2010_s19, %s2713_s15 }
 0x808   : > { %p2012_p11 = scmp.ne.s32.totalorder %s2010_s19, %s2011_s24  ;;  %p2017_p4 = scmp.lt.s32.totalorder %s2015_s28, %s2011_s24 }
 0x80a   : > { %p2013_p13 = pnand %p2012_p11, %p2302_p12  ;;  %p2018_p5 = por %p2017_p4, %p2016_p1 }
 0x80c   : > { %p2014_p0 = pneg %p2013_p13 }
 0x80e   : > { %p2019_p3 = pnand %p2018_p5, %p2014_p0 }
 0x810   : > { %2022 = shalt.err (!%p2019_p3)
}
 0x811   : > { %s2144_s20 = smov 128  }
 0x812   : > { %1680 = dma.vmem_to_hbm [thread:$0]  (%p2302_p12), %s1355_s13, 256, %s1357_s27, %s1342_s17, %s2144_s20, %s2144_s20, %s2141_s1  }
 0x813 PF: > { %s2715_s2 = sld [smem:[#allocation22_spill]] }
 0x814   : > { %s2716_s0 = sld [smem:[#allocation16_spill]] }
 0x819   : > { %p1700_p6 = scmp.ge.s32.totalorder %s2715_s2, 2 }
 0x81a   : > { %s1371_s26 = sand.u32 1, %s2716_s0  }
 0x81b   : > { %p1696_p7 = pnand %p1700_p6, %p2312_p2  ;;  %s1372_s7 = scalar_lea.sflag [#allocation5], %s1371_s26 }
 0x81d   : > { %p1697_p9 = pneg %p1696_p7 }
 0x81f   : > { %2080 = dma.done.wait (%p1697_p9), %s1372_s7, 256  }
 0x820   : > { %2082 = vsyncadd (%p1697_p9), %s1372_s7, 4294967040  ;;  %s34_s13 = sadd.s32 1, %s2715_s2   ;;  %s2718_s9 = sld [smem:[#allocation17_spill]] }
 0x821   : > { %p31_p8 = scmp.ge.s32.totalorder %s34_s13, 6   ;;  %s2719_s23 = sld [smem:[#allocation26_spill]] }
 0x822   : > { %s2720_s24 = sld [smem:[#allocation18_spill]]  ;;  %s2727_s21 = smov %s2089_s22 }
 0x823   : > { %s2721_s25 = sld [smem:[#allocation19_spill]] }
 0x824   : > { %s2722_s26 = sld [smem:[#allocation25_spill]]  ;;  %33 = sbr.rel (!%p31_p8) target bundleno = 26 (0x1a), region = 182 }
 0x825   : > { %s2723_s27 = sld [smem:[#allocation20_spill]] }
 0x826   : > { %s2724_s28 = sld [smem:[#allocation21_spill]]  ;;  %s2728_s22 = smov %s2718_s9 }
 0x827   : > { %s2725_s29 = sld [smem:[#allocation23_spill]] }
 0x828   : > { %s2726_s30 = sld [smem:[#allocation24_spill]] }
 0x829   :  { %1378 = vsyncpa [#allocation4], 1 }
 0x82a   :  { %1380 = vsyncpa [#allocation4 + $0x1], 1 }
 0x82b   :  { %1381 = vsyncpa [#allocation7], 1 }
 0x82c   :  { %1383 = vsyncpa [#allocation7 + $0x1], 1 }
 0x82d   :  { %1384 = vsyncpa [#allocation10], 1 }
 0x82e   :  { %1386 = vsyncpa [#allocation10 + $0x1], 1 }
 0x82f   :  { %1387 = vsyncpa [#allocation5], 1 }
 0x830   :  { %1389 = vsyncpa [#allocation5 + $0x1], 1 }

</bundles_post_ra>
